<compile_context>
chip_gen: v7x
topology: tpu7x:2x2x1
jax: 0.10.0
libtpu: 0.0.40
codegen_flags: <defaults>
</compile_context>

<pallas_src>
import math
import jax
import jax.numpy as jnp
from jax.experimental import pallas as pl
from jax.experimental.pallas import tpu as pltpu

_MM_DTYPE = jnp.float32   # bf16 on v6e/v7x at realistic dims; f32 accum kept
_LN_EPS = 1e-5
_LANES = 128              # lane width of the packed parameter slabs
_VROWS_PER_LAYER = 8      # ln1_g, ln1_b, bqkv, bo, ln2_g, ln2_b, b1, b2


def _mm(a, b):
    return jnp.dot(a.astype(_MM_DTYPE), b.astype(_MM_DTYPE),
                   preferred_element_type=jnp.float32)


def _bmm(eq, a, b):
    return jnp.einsum(eq, a.astype(_MM_DTYPE), b.astype(_MM_DTYPE),
                      preferred_element_type=jnp.float32)


def _layer_norm(v, g, b):
    mu = jnp.mean(v, axis=-1, keepdims=True)
    var = jnp.mean((v - mu) ** 2, axis=-1, keepdims=True)
    return (v - mu) * jax.lax.rsqrt(var + _LN_EPS) * g + b


# --------------------------------------------------------------------------
# Fused Pallas kernel: pos-emb add + L decoder layers + final layer norm
# --------------------------------------------------------------------------
def _make_fused_decoder_kernel(L, H, B, T, C, F, collect_inner):
    hd = C // H
    RPL = 3 * C + F    # wslab rows per layer: wqkv(C) + wo(C) + w1(C) + w2(F)

    def kernel(x_ref, pos_ref, mask_ref, w_ref, v_ref, out_ref):
        # fused positional-embedding add; work on flat (B*T, C) rows
        x = (x_ref[...] + pos_ref[...]).reshape(B * T, C)
        # additive key-padding bias, computed once and reused by every layer.
        # NOTE: -1e9 stands in for masked_fill(-inf); differs from the torch
        # reference only for a fully-padded row (torch -> NaN, here -> uniform).
        key_bias = mask_ref[...][:, None, :] * jnp.float32(-1e9)   # (B, 1, T)

        for l in range(L):
            rw = l * RPL
            rv = l * _VROWS_PER_LAYER
            ln1_g = v_ref[rv + 0:rv + 1, :C]
            ln1_b = v_ref[rv + 1:rv + 2, :C]
            bqkv  = v_ref[rv + 2:rv + 3, :]          # (1,128); cols >= 3C are 0
            bo    = v_ref[rv + 3:rv + 4, :C]
            ln2_g = v_ref[rv + 4:rv + 5, :C]
            ln2_b = v_ref[rv + 5:rv + 6, :C]
            b1    = v_ref[rv + 6:rv + 7, :F]
            b2    = v_ref[rv + 7:rv + 8, :C]

            # ---------------- self-attention block (pre-norm) --------------
            h = _layer_norm(x, ln1_g, ln1_b)                     # (B*T, C)
            # fused QKV projection: one full-width MXU matmul; 1/sqrt(hd)
            # already folded into the q columns / bias at pack time.
            wqkv = w_ref[rw:rw + C, :]                           # (C, 128), 0-padded
            qkv = _mm(h, wqkv) + bqkv                            # (B*T, 128)

            heads = []
            for hh in range(H):
                qh = qkv[:, hh * hd:(hh + 1) * hd].reshape(B, T, hd)
                kh = qkv[:, C + hh * hd:C + (hh + 1) * hd].reshape(B, T, hd)
                vh = qkv[:, 2 * C + hh * hd:2 * C + (hh + 1) * hd].reshape(B, T, hd)
                s = _bmm("bqd,bkd->bqk", qh, kh) + key_bias      # (B, T, T)
                m = jnp.max(s, axis=-1, keepdims=True)
                e = jnp.exp(s - m)
                p = e / jnp.sum(e, axis=-1, keepdims=True)       # exact softmax
                heads.append(_bmm("bqk,bkd->bqd", p, vh).reshape(B * T, hd))
            a = jnp.concatenate(heads, axis=1)                   # (B*T, C)

            wo = w_ref[rw + C:rw + 2 * C, :C]                    # (C, C)
            x = x + _mm(a, wo) + bo                              # residual

            # ---------------- feed-forward block (pre-norm) ----------------
            hf = _layer_norm(x, ln2_g, ln2_b)
            w1 = w_ref[rw + 2 * C:rw + 3 * C, :F]                # (C, F)
            w2 = w_ref[rw + 3 * C:rw + 3 * C + F, :C]            # (F, C)
            hf = jnp.maximum(_mm(hf, w1) + b1, 0.0)              # ReLU
            x = x + _mm(hf, w2) + b2                             # residual

            if collect_inner:
                out_ref[l, :, :] = x

        # final layer norm (decoder_normalize_before=True)
        gf = v_ref[L * _VROWS_PER_LAYER + 0:L * _VROWS_PER_LAYER + 1, :C]
        bf = v_ref[L * _VROWS_PER_LAYER + 1:L * _VROWS_PER_LAYER + 2, :C]
        out_ref[(L if collect_inner else 0), :, :] = _layer_norm(x, gf, bf)

    return kernel


# --------------------------------------------------------------------------
# One-time parameter packing (outside the per-call path): fuse QKV, fold the
# 1/sqrt(head_dim) scaling into q, pad everything into lane-dense 128-wide
# slabs so the kernel gets 2 weight operands instead of ~34.
# --------------------------------------------------------------------------
def pack_decoder_params(layers, final_ln, num_heads):
    C = layers[0]["wq"].shape[0]
    F = layers[0]["w1"].shape[1]
    hd = C // num_heads
    scaling = 1.0 / math.sqrt(hd)
    assert 3 * C <= _LANES and F <= _LANES, "packing assumes 3C, F <= 128"

    def pad_mat(m):
        m = jnp.asarray(m, jnp.float32)
        return jnp.pad(m, ((0, 0), (0, _LANES - m.shape[1])))

    def pad_vec(v):
        v = jnp.asarray(v, jnp.float32).reshape(1, -1)
        return jnp.pad(v, ((0, 0), (0, _LANES - v.shape[1])))

    w_rows, v_rows = [], []
    for p in layers:
        wqkv = jnp.concatenate([p["wq"] * scaling, p["wk"], p["wv"]], axis=1)
        bqkv = jnp.concatenate([p["bq"].reshape(-1) * scaling,
                                p["bk"].reshape(-1), p["bv"].reshape(-1)])
        w_rows += [pad_mat(wqkv), pad_mat(p["wo"]), pad_mat(p["w1"]),
                   pad_mat(p["w2"])]
        v_rows += [pad_vec(p["ln1_g"]), pad_vec(p["ln1_b"]), pad_vec(bqkv),
                   pad_vec(p["bo"]), pad_vec(p["ln2_g"]), pad_vec(p["ln2_b"]),
                   pad_vec(p["b1"]), pad_vec(p["b2"])]
    v_rows += [pad_vec(final_ln["g"]), pad_vec(final_ln["b"])]
    wslab = jnp.concatenate(w_rows, axis=0)          # (L*(3C+F), 128)
    vslab = jnp.concatenate(v_rows, axis=0)          # (8L+2,     128)
    return wslab, vslab


# --------------------------------------------------------------------------
# Sinusoidal positional embedding table (fairseq semantics)
# --------------------------------------------------------------------------
def sinusoidal_embedding_table(num_embeddings, dim, padding_idx):
    half = dim // 2
    scale = math.log(10000.0) / (half - 1)
    freq = jnp.exp(jnp.arange(half, dtype=jnp.float32) * -scale)
    pos = jnp.arange(num_embeddings, dtype=jnp.float32)[:, None] * freq[None, :]
    table = jnp.concatenate([jnp.sin(pos), jnp.cos(pos)], axis=1)
    if dim % 2 == 1:
        table = jnp.concatenate(
            [table, jnp.zeros((num_embeddings, 1), jnp.float32)], axis=1)
    table = table.at[padding_idx].set(0.0)
    return table


# --------------------------------------------------------------------------
# Wrapper (batch-first (B, T, C); identical math to the (T, B, C) reference)
# --------------------------------------------------------------------------
def transformer_decoder_func_forward(inputs, decoder_padding_mask, wslab, vslab,
                                     *, padding_idx, max_target_positions,
                                     num_heads, num_layers, ffn_dim,
                                     collect_inner_states=True):
    B, T, C = inputs.shape
    L, F = num_layers, ffn_dim
    hd = C // num_heads
    n_out = L + 1 if collect_inner_states else 1

    # ---- preprocess / forward_embedding (eval mode -> dropout inactive) ----
    mask_i = decoder_padding_mask.astype(jnp.int32)
    pos_tokens = mask_i * padding_idx + (1 - mask_i) * (padding_idx + 1)
    ne = (pos_tokens != padding_idx).astype(jnp.int32)
    positions = jnp.cumsum(ne, axis=1) * ne + padding_idx       # make_positions
    table = sinusoidal_embedding_table(max_target_positions + padding_idx + 1,
                                       C, padding_idx)
    # TODO(synk): the positional table gather is data-dependent and stays in
    # plain JAX; the pos-emb *add* itself is fused into the Pallas kernel.
    pos_emb = table[positions]                                  # (B, T, C)
    mask_f = decoder_padding_mask.astype(jnp.float32)           # (B, T)

    kernel = _make_fused_decoder_kernel(L, num_heads, B, T, C, F,
                                        collect_inner_states)

    # advisory cost hint for XLA scheduling of the fused call
    BT = B * T
    matmul_flops = L * 2 * (BT * C * 3 * C                      # fused QKV
                            + 2 * B * num_heads * T * T * hd    # scores + AV
                            + BT * C * C                        # out proj
                            + 2 * BT * C * F)                   # FFN
    flops = matmul_flops + (2 * L + 1) * 10 * BT * C            # LN/softmax/etc.
    transc = L * B * num_heads * T * T + (2 * L + 1) * BT
    byts = 4 * (2 * B * T * C + B * T + int(wslab.size) + int(vslab.size)
                + n_out * BT * C)

    vmem = pl.BlockSpec(memory_space=pltpu.MemorySpace.VMEM)
    outs = pl.pallas_call(
        kernel,
        out_shape=jax.ShapeDtypeStruct((n_out, BT, C), jnp.float32),
        in_specs=[vmem] * 5,
        out_specs=vmem,
        cost_estimate=pl.CostEstimate(flops=flops, transcendentals=transc,
                                      bytes_accessed=byts),
    )(inputs, pos_emb, mask_f, wslab, vslab)

    outs = outs.reshape(n_out, B, T, C)
    if collect_inner_states:
        x = outs[L]
        inner_states = [outs[i] for i in range(L)]
    else:
        x = outs[0]
        inner_states = []
    # encoder_out is None -> no cross-attention -> attn stays None
    attn = None
    return x, {"attn": [attn], "inner_states": inner_states}


# --------------------------------------------------------------------------
# Deterministic synthetic parameter init (shapes from the module __init__).
# Linear weights stored as (in_features, out_features) so y = x @ W + b.
# --------------------------------------------------------------------------
def init_params(key, C, F, num_layers):
    layers = []
    for _ in range(num_layers):
        key, *ks = jax.random.split(key, 7)
        layers.append({
            "ln1_g": jnp.ones((1, C), jnp.float32),
            "ln1_b": jnp.zeros((1, C), jnp.float32),
            "wq": 0.1 * jax.random.normal(ks[0], (C, C), jnp.float32),
            "bq": jnp.zeros((1, C), jnp.float32),
            "wk": 0.1 * jax.random.normal(ks[1], (C, C), jnp.float32),
            "bk": jnp.zeros((1, C), jnp.float32),
            "wv": 0.1 * jax.random.normal(ks[2], (C, C), jnp.float32),
            "bv": jnp.zeros((1, C), jnp.float32),
            "wo": 0.1 * jax.random.normal(ks[3], (C, C), jnp.float32),
            "bo": jnp.zeros((1, C), jnp.float32),
            "ln2_g": jnp.ones((1, C), jnp.float32),
            "ln2_b": jnp.zeros((1, C), jnp.float32),
            "w1": 0.1 * jax.random.normal(ks[4], (C, F), jnp.float32),
            "b1": jnp.zeros((1, F), jnp.float32),
            "w2": 0.1 * jax.random.normal(ks[5], (F, C), jnp.float32),
            "b2": jnp.zeros((1, C), jnp.float32),
        })
    final_ln = {"g": jnp.ones((1, C), jnp.float32),
                "b": jnp.zeros((1, C), jnp.float32)}
    return layers, final_ln


# --------------------------------------------------------------------------
if __name__ == "__main__":
    B, T, C, F, H, L = 2, 8, 32, 64, 4, 2
    padding_idx = 1
    max_target_positions = 64

    key = jax.random.PRNGKey(0)
    k_in, k_p = jax.random.split(key)
    inputs = jax.random.normal(k_in, (B, T, C), jnp.float32)
    decoder_padding_mask = jnp.zeros((B, T), jnp.bool_).at[1, T - 2:].set(True)

    layers, final_ln = init_params(k_p, C, F, L)
    # one-time weight prep (outside jit / the per-call path)
    wslab, vslab = pack_decoder_params(layers, final_ln, H)

    @jax.jit
    def fwd(x, mask, wslab, vslab):
        return transformer_decoder_func_forward(
            x, mask, wslab, vslab,
            padding_idx=padding_idx,
            max_target_positions=max_target_positions,
            num_heads=H, num_layers=L, ffn_dim=F,
            collect_inner_states=True)

    out, extra = fwd(inputs, decoder_padding_mask, wslab, vslab)
    jax.block_until_ready(out)
    assert out.shape == (B, T, C)
    assert len(extra["inner_states"]) == L
    assert extra["attn"] == [None]
    print("KERNEL_OK")
</pallas_src>

<mosaic_0001>
module attributes {stable_mosaic.version = 11 : i64} {
  func.func @kernel(%arg0: memref<2x8x32xf32, #tpu.memory_space<vmem>>, %arg1: memref<2x8x32xf32, #tpu.memory_space<vmem>>, %arg2: memref<2x8xf32, #tpu.memory_space<vmem>>, %arg3: memref<320x128xf32, #tpu.memory_space<vmem>>, %arg4: memref<18x128xf32, #tpu.memory_space<vmem>>, %arg5: memref<3x16x32xf32, #tpu.memory_space<vmem>>) attributes {dimension_semantics = [], scalar_prefetch = 0 : i64, scratch_operands = 0 : i64, tpu.core_type = #tpu.core_type<tc>} {
    %c0 = arith.constant 0 : index
    %c0_0 = arith.constant 0 : index
    %c0_1 = arith.constant 0 : index
    %0 = vector.load %arg0[%c0, %c0_0, %c0_1] : memref<2x8x32xf32, #tpu.memory_space<vmem>>, vector<2x8x32xf32>
    %c0_2 = arith.constant 0 : index
    %c0_3 = arith.constant 0 : index
    %c0_4 = arith.constant 0 : index
    %1 = vector.load %arg1[%c0_2, %c0_3, %c0_4] : memref<2x8x32xf32, #tpu.memory_space<vmem>>, vector<2x8x32xf32>
    %2 = arith.addf %0, %1 : vector<2x8x32xf32>
    %3 = vector.shape_cast %2 : vector<2x8x32xf32> to vector<16x32xf32>
    %c0_5 = arith.constant 0 : index
    %c0_6 = arith.constant 0 : index
    %4 = vector.load %arg2[%c0_5, %c0_6] : memref<2x8xf32, #tpu.memory_space<vmem>>, vector<2x8xf32>
    %5 = vector.shape_cast %4 : vector<2x8xf32> to vector<2x1x8xf32>
    %cst = arith.constant -1.000000e+09 : f32
    %6 = vector.broadcast %cst : f32 to vector<2x1x8xf32>
    %7 = arith.mulf %5, %6 : vector<2x1x8xf32>
    %c0_7 = arith.constant 0 : index
    %c0_8 = arith.constant 0 : index
    %8 = vector.load %arg4[%c0_7, %c0_8] : memref<18x128xf32, #tpu.memory_space<vmem>>, vector<1x32xf32>
    %c1 = arith.constant 1 : index
    %c0_9 = arith.constant 0 : index
    %9 = vector.load %arg4[%c1, %c0_9] : memref<18x128xf32, #tpu.memory_space<vmem>>, vector<1x32xf32>
    %c2 = arith.constant 2 : index
    %c0_10 = arith.constant 0 : index
    %10 = vector.load %arg4[%c2, %c0_10] : memref<18x128xf32, #tpu.memory_space<vmem>>, vector<1x128xf32>
    %c3 = arith.constant 3 : index
    %c0_11 = arith.constant 0 : index
    %11 = vector.load %arg4[%c3, %c0_11] : memref<18x128xf32, #tpu.memory_space<vmem>>, vector<1x32xf32>
    %c4 = arith.constant 4 : index
    %c0_12 = arith.constant 0 : index
    %12 = vector.load %arg4[%c4, %c0_12] : memref<18x128xf32, #tpu.memory_space<vmem>>, vector<1x32xf32>
    %c5 = arith.constant 5 : index
    %c0_13 = arith.constant 0 : index
    %13 = vector.load %arg4[%c5, %c0_13] : memref<18x128xf32, #tpu.memory_space<vmem>>, vector<1x32xf32>
    %c6 = arith.constant 6 : index
    %c0_14 = arith.constant 0 : index
    %14 = vector.load %arg4[%c6, %c0_14] : memref<18x128xf32, #tpu.memory_space<vmem>>, vector<1x64xf32>
    %c7 = arith.constant 7 : index
    %c0_15 = arith.constant 0 : index
    %15 = vector.load %arg4[%c7, %c0_15] : memref<18x128xf32, #tpu.memory_space<vmem>>, vector<1x32xf32>
    %cst_16 = arith.constant dense<0.000000e+00> : vector<16xf32>
    %16 = vector.multi_reduction <add>, %3, %cst_16 [1] : vector<16x32xf32> to vector<16xf32>
    %17 = vector.shape_cast %16 : vector<16xf32> to vector<16x1xf32>
    %cst_17 = arith.constant 3.200000e+01 : f32
    %18 = vector.broadcast %cst_17 : f32 to vector<16x1xf32>
    %19 = arith.divf %17, %18 : vector<16x1xf32>
    %20 = vector.broadcast %19 : vector<16x1xf32> to vector<16x32xf32>
    %21 = arith.subf %3, %20 : vector<16x32xf32>
    %22 = arith.mulf %21, %21 : vector<16x32xf32>
    %cst_18 = arith.constant dense<0.000000e+00> : vector<16xf32>
    %23 = vector.multi_reduction <add>, %22, %cst_18 [1] : vector<16x32xf32> to vector<16xf32>
    %24 = vector.shape_cast %23 : vector<16xf32> to vector<16x1xf32>
    %cst_19 = arith.constant 3.200000e+01 : f32
    %25 = vector.broadcast %cst_19 : f32 to vector<16x1xf32>
    %26 = arith.divf %24, %25 : vector<16x1xf32>
    %27 = vector.broadcast %19 : vector<16x1xf32> to vector<16x32xf32>
    %28 = arith.subf %3, %27 : vector<16x32xf32>
    %cst_20 = arith.constant 9.99999974E-6 : f32
    %29 = vector.broadcast %cst_20 : f32 to vector<16x1xf32>
    %30 = arith.addf %26, %29 : vector<16x1xf32>
    %31 = math.rsqrt %30 : vector<16x1xf32>
    %32 = vector.broadcast %31 : vector<16x1xf32> to vector<16x32xf32>
    %33 = arith.mulf %28, %32 : vector<16x32xf32>
    %34 = vector.broadcast %8 : vector<1x32xf32> to vector<16x32xf32>
    %35 = arith.mulf %33, %34 : vector<16x32xf32>
    %36 = vector.broadcast %9 : vector<1x32xf32> to vector<16x32xf32>
    %37 = arith.addf %35, %36 : vector<16x32xf32>
    %c0_21 = arith.constant 0 : index
    %c0_22 = arith.constant 0 : index
    %38 = vector.load %arg3[%c0_21, %c0_22] : memref<320x128xf32, #tpu.memory_space<vmem>>, vector<32x128xf32>
    %cst_23 = arith.constant dense<0.000000e+00> : vector<16x128xf32>
    %39 = tpu.matmul %37, %38, %cst_23 {dimension_numbers = #tpu.dot_dimension_numbers<[1], [0], [0], [1], [0, 0, 1, 1], [], []>} : vector<16x32xf32>, vector<32x128xf32>, vector<16x128xf32> -> vector<16x128xf32>
    %40 = vector.broadcast %10 : vector<1x128xf32> to vector<16x128xf32>
    %41 = arith.addf %39, %40 : vector<16x128xf32>
    %42 = vector.extract_strided_slice %41 {offsets = [0, 0], sizes = [16, 8], strides = [1, 1]} : vector<16x128xf32> to vector<16x8xf32>
    %43 = vector.shape_cast %42 : vector<16x8xf32> to vector<2x8x8xf32>
    %44 = vector.extract_strided_slice %41 {offsets = [0, 32], sizes = [16, 8], strides = [1, 1]} : vector<16x128xf32> to vector<16x8xf32>
    %45 = vector.shape_cast %44 : vector<16x8xf32> to vector<2x8x8xf32>
    %46 = vector.extract_strided_slice %41 {offsets = [0, 64], sizes = [16, 8], strides = [1, 1]} : vector<16x128xf32> to vector<16x8xf32>
    %47 = vector.shape_cast %46 : vector<16x8xf32> to vector<2x8x8xf32>
    "tpu.trace_start"() <{level = 10 : i32, message = "bqd,bkd->bqk"}> : () -> ()
    %cst_24 = arith.constant dense<0.000000e+00> : vector<2x8x8xf32>
    %48 = tpu.matmul %43, %45, %cst_24 {dimension_numbers = #tpu.dot_dimension_numbers<[2], [2], [1], [1], [0, 0, 0, 1, 1, 1], [0], [0]>} : vector<2x8x8xf32>, vector<2x8x8xf32>, vector<2x8x8xf32> -> vector<2x8x8xf32>
    "tpu.trace_stop"() : () -> ()
    %49 = vector.broadcast %7 : vector<2x1x8xf32> to vector<2x8x8xf32>
    %50 = arith.addf %48, %49 : vector<2x8x8xf32>
    %cst_25 = arith.constant dense<0xFF800000> : vector<2x8xf32>
    %51 = vector.multi_reduction <maximumf>, %50, %cst_25 [2] : vector<2x8x8xf32> to vector<2x8xf32>
    %52 = vector.shape_cast %51 : vector<2x8xf32> to vector<2x8x1xf32>
    %53 = vector.broadcast %52 : vector<2x8x1xf32> to vector<2x8x8xf32>
    %54 = arith.subf %50, %53 : vector<2x8x8xf32>
    %55 = math.exp %54 : vector<2x8x8xf32>
    %cst_26 = arith.constant dense<0.000000e+00> : vector<2x8xf32>
    %56 = vector.multi_reduction <add>, %55, %cst_26 [2] : vector<2x8x8xf32> to vector<2x8xf32>
    %57 = vector.shape_cast %56 : vector<2x8xf32> to vector<2x8x1xf32>
    %58 = vector.broadcast %57 : vector<2x8x1xf32> to vector<2x8x8xf32>
    %59 = arith.divf %55, %58 : vector<2x8x8xf32>
    "tpu.trace_start"() <{level = 10 : i32, message = "bqk,bkd->bqd"}> : () -> ()
    %cst_27 = arith.constant dense<0.000000e+00> : vector<2x8x8xf32>
    %60 = tpu.matmul %59, %47, %cst_27 {dimension_numbers = #tpu.dot_dimension_numbers<[2], [1], [1], [2], [0, 0, 0, 1, 1, 2], [0], [0]>} : vector<2x8x8xf32>, vector<2x8x8xf32>, vector<2x8x8xf32> -> vector<2x8x8xf32>
    "tpu.trace_stop"() : () -> ()
    %61 = vector.shape_cast %60 : vector<2x8x8xf32> to vector<16x8xf32>
    %62 = vector.extract_strided_slice %41 {offsets = [0, 8], sizes = [16, 8], strides = [1, 1]} : vector<16x128xf32> to vector<16x8xf32>
    %63 = vector.shape_cast %62 : vector<16x8xf32> to vector<2x8x8xf32>
    %64 = vector.extract_strided_slice %41 {offsets = [0, 40], sizes = [16, 8], strides = [1, 1]} : vector<16x128xf32> to vector<16x8xf32>
    %65 = vector.shape_cast %64 : vector<16x8xf32> to vector<2x8x8xf32>
    %66 = vector.extract_strided_slice %41 {offsets = [0, 72], sizes = [16, 8], strides = [1, 1]} : vector<16x128xf32> to vector<16x8xf32>
    %67 = vector.shape_cast %66 : vector<16x8xf32> to vector<2x8x8xf32>
    "tpu.trace_start"() <{level = 10 : i32, message = "bqd,bkd->bqk"}> : () -> ()
    %cst_28 = arith.constant dense<0.000000e+00> : vector<2x8x8xf32>
    %68 = tpu.matmul %63, %65, %cst_28 {dimension_numbers = #tpu.dot_dimension_numbers<[2], [2], [1], [1], [0, 0, 0, 1, 1, 1], [0], [0]>} : vector<2x8x8xf32>, vector<2x8x8xf32>, vector<2x8x8xf32> -> vector<2x8x8xf32>
    "tpu.trace_stop"() : () -> ()
    %69 = vector.broadcast %7 : vector<2x1x8xf32> to vector<2x8x8xf32>
    %70 = arith.addf %68, %69 : vector<2x8x8xf32>
    %cst_29 = arith.constant dense<0xFF800000> : vector<2x8xf32>
    %71 = vector.multi_reduction <maximumf>, %70, %cst_29 [2] : vector<2x8x8xf32> to vector<2x8xf32>
    %72 = vector.shape_cast %71 : vector<2x8xf32> to vector<2x8x1xf32>
    %73 = vector.broadcast %72 : vector<2x8x1xf32> to vector<2x8x8xf32>
    %74 = arith.subf %70, %73 : vector<2x8x8xf32>
    %75 = math.exp %74 : vector<2x8x8xf32>
    %cst_30 = arith.constant dense<0.000000e+00> : vector<2x8xf32>
    %76 = vector.multi_reduction <add>, %75, %cst_30 [2] : vector<2x8x8xf32> to vector<2x8xf32>
    %77 = vector.shape_cast %76 : vector<2x8xf32> to vector<2x8x1xf32>
    %78 = vector.broadcast %77 : vector<2x8x1xf32> to vector<2x8x8xf32>
    %79 = arith.divf %75, %78 : vector<2x8x8xf32>
    "tpu.trace_start"() <{level = 10 : i32, message = "bqk,bkd->bqd"}> : () -> ()
    %cst_31 = arith.constant dense<0.000000e+00> : vector<2x8x8xf32>
    %80 = tpu.matmul %79, %67, %cst_31 {dimension_numbers = #tpu.dot_dimension_numbers<[2], [1], [1], [2], [0, 0, 0, 1, 1, 2], [0], [0]>} : vector<2x8x8xf32>, vector<2x8x8xf32>, vector<2x8x8xf32> -> vector<2x8x8xf32>
    "tpu.trace_stop"() : () -> ()
    %81 = vector.shape_cast %80 : vector<2x8x8xf32> to vector<16x8xf32>
    %82 = vector.extract_strided_slice %41 {offsets = [0, 16], sizes = [16, 8], strides = [1, 1]} : vector<16x128xf32> to vector<16x8xf32>
    %83 = vector.shape_cast %82 : vector<16x8xf32> to vector<2x8x8xf32>
    %84 = vector.extract_strided_slice %41 {offsets = [0, 48], sizes = [16, 8], strides = [1, 1]} : vector<16x128xf32> to vector<16x8xf32>
    %85 = vector.shape_cast %84 : vector<16x8xf32> to vector<2x8x8xf32>
    %86 = vector.extract_strided_slice %41 {offsets = [0, 80], sizes = [16, 8], strides = [1, 1]} : vector<16x128xf32> to vector<16x8xf32>
    %87 = vector.shape_cast %86 : vector<16x8xf32> to vector<2x8x8xf32>
    "tpu.trace_start"() <{level = 10 : i32, message = "bqd,bkd->bqk"}> : () -> ()
    %cst_32 = arith.constant dense<0.000000e+00> : vector<2x8x8xf32>
    %88 = tpu.matmul %83, %85, %cst_32 {dimension_numbers = #tpu.dot_dimension_numbers<[2], [2], [1], [1], [0, 0, 0, 1, 1, 1], [0], [0]>} : vector<2x8x8xf32>, vector<2x8x8xf32>, vector<2x8x8xf32> -> vector<2x8x8xf32>
    "tpu.trace_stop"() : () -> ()
    %89 = vector.broadcast %7 : vector<2x1x8xf32> to vector<2x8x8xf32>
    %90 = arith.addf %88, %89 : vector<2x8x8xf32>
    %cst_33 = arith.constant dense<0xFF800000> : vector<2x8xf32>
    %91 = vector.multi_reduction <maximumf>, %90, %cst_33 [2] : vector<2x8x8xf32> to vector<2x8xf32>
    %92 = vector.shape_cast %91 : vector<2x8xf32> to vector<2x8x1xf32>
    %93 = vector.broadcast %92 : vector<2x8x1xf32> to vector<2x8x8xf32>
    %94 = arith.subf %90, %93 : vector<2x8x8xf32>
    %95 = math.exp %94 : vector<2x8x8xf32>
    %cst_34 = arith.constant dense<0.000000e+00> : vector<2x8xf32>
    %96 = vector.multi_reduction <add>, %95, %cst_34 [2] : vector<2x8x8xf32> to vector<2x8xf32>
    %97 = vector.shape_cast %96 : vector<2x8xf32> to vector<2x8x1xf32>
    %98 = vector.broadcast %97 : vector<2x8x1xf32> to vector<2x8x8xf32>
    %99 = arith.divf %95, %98 : vector<2x8x8xf32>
    "tpu.trace_start"() <{level = 10 : i32, message = "bqk,bkd->bqd"}> : () -> ()
    %cst_35 = arith.constant dense<0.000000e+00> : vector<2x8x8xf32>
    %100 = tpu.matmul %99, %87, %cst_35 {dimension_numbers = #tpu.dot_dimension_numbers<[2], [1], [1], [2], [0, 0, 0, 1, 1, 2], [0], [0]>} : vector<2x8x8xf32>, vector<2x8x8xf32>, vector<2x8x8xf32> -> vector<2x8x8xf32>
    "tpu.trace_stop"() : () -> ()
    %101 = vector.shape_cast %100 : vector<2x8x8xf32> to vector<16x8xf32>
    %102 = vector.extract_strided_slice %41 {offsets = [0, 24], sizes = [16, 8], strides = [1, 1]} : vector<16x128xf32> to vector<16x8xf32>
    %103 = vector.shape_cast %102 : vector<16x8xf32> to vector<2x8x8xf32>
    %104 = vector.extract_strided_slice %41 {offsets = [0, 56], sizes = [16, 8], strides = [1, 1]} : vector<16x128xf32> to vector<16x8xf32>
    %105 = vector.shape_cast %104 : vector<16x8xf32> to vector<2x8x8xf32>
    %106 = vector.extract_strided_slice %41 {offsets = [0, 88], sizes = [16, 8], strides = [1, 1]} : vector<16x128xf32> to vector<16x8xf32>
    %107 = vector.shape_cast %106 : vector<16x8xf32> to vector<2x8x8xf32>
    "tpu.trace_start"() <{level = 10 : i32, message = "bqd,bkd->bqk"}> : () -> ()
    %cst_36 = arith.constant dense<0.000000e+00> : vector<2x8x8xf32>
    %108 = tpu.matmul %103, %105, %cst_36 {dimension_numbers = #tpu.dot_dimension_numbers<[2], [2], [1], [1], [0, 0, 0, 1, 1, 1], [0], [0]>} : vector<2x8x8xf32>, vector<2x8x8xf32>, vector<2x8x8xf32> -> vector<2x8x8xf32>
    "tpu.trace_stop"() : () -> ()
    %109 = vector.broadcast %7 : vector<2x1x8xf32> to vector<2x8x8xf32>
    %110 = arith.addf %108, %109 : vector<2x8x8xf32>
    %cst_37 = arith.constant dense<0xFF800000> : vector<2x8xf32>
    %111 = vector.multi_reduction <maximumf>, %110, %cst_37 [2] : vector<2x8x8xf32> to vector<2x8xf32>
    %112 = vector.shape_cast %111 : vector<2x8xf32> to vector<2x8x1xf32>
    %113 = vector.broadcast %112 : vector<2x8x1xf32> to vector<2x8x8xf32>
    %114 = arith.subf %110, %113 : vector<2x8x8xf32>
    %115 = math.exp %114 : vector<2x8x8xf32>
    %cst_38 = arith.constant dense<0.000000e+00> : vector<2x8xf32>
    %116 = vector.multi_reduction <add>, %115, %cst_38 [2] : vector<2x8x8xf32> to vector<2x8xf32>
    %117 = vector.shape_cast %116 : vector<2x8xf32> to vector<2x8x1xf32>
    %118 = vector.broadcast %117 : vector<2x8x1xf32> to vector<2x8x8xf32>
    %119 = arith.divf %115, %118 : vector<2x8x8xf32>
    "tpu.trace_start"() <{level = 10 : i32, message = "bqk,bkd->bqd"}> : () -> ()
    %cst_39 = arith.constant dense<0.000000e+00> : vector<2x8x8xf32>
    %120 = tpu.matmul %119, %107, %cst_39 {dimension_numbers = #tpu.dot_dimension_numbers<[2], [1], [1], [2], [0, 0, 0, 1, 1, 2], [0], [0]>} : vector<2x8x8xf32>, vector<2x8x8xf32>, vector<2x8x8xf32> -> vector<2x8x8xf32>
    "tpu.trace_stop"() : () -> ()
    %121 = vector.shape_cast %120 : vector<2x8x8xf32> to vector<16x8xf32>
    %122 = tpu.concatenate %61, %81, %101, %121 in 1 : vector<16x8xf32>, vector<16x8xf32>, vector<16x8xf32>, vector<16x8xf32> -> vector<16x32xf32>
    %c32 = arith.constant 32 : index
    %c0_40 = arith.constant 0 : index
    %123 = vector.load %arg3[%c32, %c0_40] : memref<320x128xf32, #tpu.memory_space<vmem>>, vector<32x32xf32>
    %cst_41 = arith.constant dense<0.000000e+00> : vector<16x32xf32>
    %124 = tpu.matmul %122, %123, %cst_41 {dimension_numbers = #tpu.dot_dimension_numbers<[1], [0], [0], [1], [0, 0, 1, 1], [], []>} : vector<16x32xf32>, vector<32x32xf32>, vector<16x32xf32> -> vector<16x32xf32>
    %125 = arith.addf %3, %124 : vector<16x32xf32>
    %126 = vector.broadcast %11 : vector<1x32xf32> to vector<16x32xf32>
    %127 = arith.addf %125, %126 : vector<16x32xf32>
    %cst_42 = arith.constant dense<0.000000e+00> : vector<16xf32>
    %128 = vector.multi_reduction <add>, %127, %cst_42 [1] : vector<16x32xf32> to vector<16xf32>
    %129 = vector.shape_cast %128 : vector<16xf32> to vector<16x1xf32>
    %cst_43 = arith.constant 3.200000e+01 : f32
    %130 = vector.broadcast %cst_43 : f32 to vector<16x1xf32>
    %131 = arith.divf %129, %130 : vector<16x1xf32>
    %132 = vector.broadcast %131 : vector<16x1xf32> to vector<16x32xf32>
    %133 = arith.subf %127, %132 : vector<16x32xf32>
    %134 = arith.mulf %133, %133 : vector<16x32xf32>
    %cst_44 = arith.constant dense<0.000000e+00> : vector<16xf32>
    %135 = vector.multi_reduction <add>, %134, %cst_44 [1] : vector<16x32xf32> to vector<16xf32>
    %136 = vector.shape_cast %135 : vector<16xf32> to vector<16x1xf32>
    %cst_45 = arith.constant 3.200000e+01 : f32
    %137 = vector.broadcast %cst_45 : f32 to vector<16x1xf32>
    %138 = arith.divf %136, %137 : vector<16x1xf32>
    %139 = vector.broadcast %131 : vector<16x1xf32> to vector<16x32xf32>
    %140 = arith.subf %127, %139 : vector<16x32xf32>
    %cst_46 = arith.constant 9.99999974E-6 : f32
    %141 = vector.broadcast %cst_46 : f32 to vector<16x1xf32>
    %142 = arith.addf %138, %141 : vector<16x1xf32>
    %143 = math.rsqrt %142 : vector<16x1xf32>
    %144 = vector.broadcast %143 : vector<16x1xf32> to vector<16x32xf32>
    %145 = arith.mulf %140, %144 : vector<16x32xf32>
    %146 = vector.broadcast %12 : vector<1x32xf32> to vector<16x32xf32>
    %147 = arith.mulf %145, %146 : vector<16x32xf32>
    %148 = vector.broadcast %13 : vector<1x32xf32> to vector<16x32xf32>
    %149 = arith.addf %147, %148 : vector<16x32xf32>
    %c64 = arith.constant 64 : index
    %c0_47 = arith.constant 0 : index
    %150 = vector.load %arg3[%c64, %c0_47] : memref<320x128xf32, #tpu.memory_space<vmem>>, vector<32x64xf32>
    %c96 = arith.constant 96 : index
    %c0_48 = arith.constant 0 : index
    %151 = vector.load %arg3[%c96, %c0_48] : memref<320x128xf32, #tpu.memory_space<vmem>>, vector<64x32xf32>
    %cst_49 = arith.constant dense<0.000000e+00> : vector<16x64xf32>
    %152 = tpu.matmul %149, %150, %cst_49 {dimension_numbers = #tpu.dot_dimension_numbers<[1], [0], [0], [1], [0, 0, 1, 1], [], []>} : vector<16x32xf32>, vector<32x64xf32>, vector<16x64xf32> -> vector<16x64xf32>
    %153 = vector.broadcast %14 : vector<1x64xf32> to vector<16x64xf32>
    %154 = arith.addf %152, %153 : vector<16x64xf32>
    %cst_50 = arith.constant 0.000000e+00 : f32
    %155 = vector.broadcast %cst_50 : f32 to vector<16x64xf32>
    %156 = arith.maximumf %154, %155 : vector<16x64xf32>
    %cst_51 = arith.constant dense<0.000000e+00> : vector<16x32xf32>
    %157 = tpu.matmul %156, %151, %cst_51 {dimension_numbers = #tpu.dot_dimension_numbers<[1], [0], [0], [1], [0, 0, 1, 1], [], []>} : vector<16x64xf32>, vector<64x32xf32>, vector<16x32xf32> -> vector<16x32xf32>
    %158 = arith.addf %127, %157 : vector<16x32xf32>
    %159 = vector.broadcast %15 : vector<1x32xf32> to vector<16x32xf32>
    %160 = arith.addf %158, %159 : vector<16x32xf32>
    %c0_52 = arith.constant 0 : index
    %c0_53 = arith.constant 0 : index
    %c0_54 = arith.constant 0 : index
    %161 = vector.load %arg5[%c0_52, %c0_53, %c0_54] : memref<3x16x32xf32, #tpu.memory_space<vmem>>, vector<1x16x32xf32>
    %162 = vector.shape_cast %161 : vector<1x16x32xf32> to vector<16x32xf32>
    %163 = vector.shape_cast %160 : vector<16x32xf32> to vector<1x16x32xf32>
    tpu.vector_store %arg5[%c0_52, %c0_53, %c0_54], %163 {strides = array<i32>} : memref<3x16x32xf32, #tpu.memory_space<vmem>>, vector<1x16x32xf32>,
    %c8 = arith.constant 8 : index
    %c0_55 = arith.constant 0 : index
    %164 = vector.load %arg4[%c8, %c0_55] : memref<18x128xf32, #tpu.memory_space<vmem>>, vector<1x32xf32>
    %c9 = arith.constant 9 : index
    %c0_56 = arith.constant 0 : index
    %165 = vector.load %arg4[%c9, %c0_56] : memref<18x128xf32, #tpu.memory_space<vmem>>, vector<1x32xf32>
    %c10 = arith.constant 10 : index
    %c0_57 = arith.constant 0 : index
    %166 = vector.load %arg4[%c10, %c0_57] : memref<18x128xf32, #tpu.memory_space<vmem>>, vector<1x128xf32>
    %c11 = arith.constant 11 : index
    %c0_58 = arith.constant 0 : index
    %167 = vector.load %arg4[%c11, %c0_58] : memref<18x128xf32, #tpu.memory_space<vmem>>, vector<1x32xf32>
    %c12 = arith.constant 12 : index
    %c0_59 = arith.constant 0 : index
    %168 = vector.load %arg4[%c12, %c0_59] : memref<18x128xf32, #tpu.memory_space<vmem>>, vector<1x32xf32>
    %c13 = arith.constant 13 : index
    %c0_60 = arith.constant 0 : index
    %169 = vector.load %arg4[%c13, %c0_60] : memref<18x128xf32, #tpu.memory_space<vmem>>, vector<1x32xf32>
    %c14 = arith.constant 14 : index
    %c0_61 = arith.constant 0 : index
    %170 = vector.load %arg4[%c14, %c0_61] : memref<18x128xf32, #tpu.memory_space<vmem>>, vector<1x64xf32>
    %c15 = arith.constant 15 : index
    %c0_62 = arith.constant 0 : index
    %171 = vector.load %arg4[%c15, %c0_62] : memref<18x128xf32, #tpu.memory_space<vmem>>, vector<1x32xf32>
    %cst_63 = arith.constant dense<0.000000e+00> : vector<16xf32>
    %172 = vector.multi_reduction <add>, %160, %cst_63 [1] : vector<16x32xf32> to vector<16xf32>
    %173 = vector.shape_cast %172 : vector<16xf32> to vector<16x1xf32>
    %cst_64 = arith.constant 3.200000e+01 : f32
    %174 = vector.broadcast %cst_64 : f32 to vector<16x1xf32>
    %175 = arith.divf %173, %174 : vector<16x1xf32>
    %176 = vector.broadcast %175 : vector<16x1xf32> to vector<16x32xf32>
    %177 = arith.subf %160, %176 : vector<16x32xf32>
    %178 = arith.mulf %177, %177 : vector<16x32xf32>
    %cst_65 = arith.constant dense<0.000000e+00> : vector<16xf32>
    %179 = vector.multi_reduction <add>, %178, %cst_65 [1] : vector<16x32xf32> to vector<16xf32>
    %180 = vector.shape_cast %179 : vector<16xf32> to vector<16x1xf32>
    %cst_66 = arith.constant 3.200000e+01 : f32
    %181 = vector.broadcast %cst_66 : f32 to vector<16x1xf32>
    %182 = arith.divf %180, %181 : vector<16x1xf32>
    %183 = vector.broadcast %175 : vector<16x1xf32> to vector<16x32xf32>
    %184 = arith.subf %160, %183 : vector<16x32xf32>
    %cst_67 = arith.constant 9.99999974E-6 : f32
    %185 = vector.broadcast %cst_67 : f32 to vector<16x1xf32>
    %186 = arith.addf %182, %185 : vector<16x1xf32>
    %187 = math.rsqrt %186 : vector<16x1xf32>
    %188 = vector.broadcast %187 : vector<16x1xf32> to vector<16x32xf32>
    %189 = arith.mulf %184, %188 : vector<16x32xf32>
    %190 = vector.broadcast %164 : vector<1x32xf32> to vector<16x32xf32>
    %191 = arith.mulf %189, %190 : vector<16x32xf32>
    %192 = vector.broadcast %165 : vector<1x32xf32> to vector<16x32xf32>
    %193 = arith.addf %191, %192 : vector<16x32xf32>
    %c160 = arith.constant 160 : index
    %c0_68 = arith.constant 0 : index
    %194 = vector.load %arg3[%c160, %c0_68] : memref<320x128xf32, #tpu.memory_space<vmem>>, vector<32x128xf32>
    %cst_69 = arith.constant dense<0.000000e+00> : vector<16x128xf32>
    %195 = tpu.matmul %193, %194, %cst_69 {dimension_numbers = #tpu.dot_dimension_numbers<[1], [0], [0], [1], [0, 0, 1, 1], [], []>} : vector<16x32xf32>, vector<32x128xf32>, vector<16x128xf32> -> vector<16x128xf32>
    %196 = vector.broadcast %166 : vector<1x128xf32> to vector<16x128xf32>
    %197 = arith.addf %195, %196 : vector<16x128xf32>
    %198 = vector.extract_strided_slice %197 {offsets = [0, 0], sizes = [16, 8], strides = [1, 1]} : vector<16x128xf32> to vector<16x8xf32>
    %199 = vector.shape_cast %198 : vector<16x8xf32> to vector<2x8x8xf32>
    %200 = vector.extract_strided_slice %197 {offsets = [0, 32], sizes = [16, 8], strides = [1, 1]} : vector<16x128xf32> to vector<16x8xf32>
    %201 = vector.shape_cast %200 : vector<16x8xf32> to vector<2x8x8xf32>
    %202 = vector.extract_strided_slice %197 {offsets = [0, 64], sizes = [16, 8], strides = [1, 1]} : vector<16x128xf32> to vector<16x8xf32>
    %203 = vector.shape_cast %202 : vector<16x8xf32> to vector<2x8x8xf32>
    "tpu.trace_start"() <{level = 10 : i32, message = "bqd,bkd->bqk"}> : () -> ()
    %cst_70 = arith.constant dense<0.000000e+00> : vector<2x8x8xf32>
    %204 = tpu.matmul %199, %201, %cst_70 {dimension_numbers = #tpu.dot_dimension_numbers<[2], [2], [1], [1], [0, 0, 0, 1, 1, 1], [0], [0]>} : vector<2x8x8xf32>, vector<2x8x8xf32>, vector<2x8x8xf32> -> vector<2x8x8xf32>
    "tpu.trace_stop"() : () -> ()
    %205 = vector.broadcast %7 : vector<2x1x8xf32> to vector<2x8x8xf32>
    %206 = arith.addf %204, %205 : vector<2x8x8xf32>
    %cst_71 = arith.constant dense<0xFF800000> : vector<2x8xf32>
    %207 = vector.multi_reduction <maximumf>, %206, %cst_71 [2] : vector<2x8x8xf32> to vector<2x8xf32>
    %208 = vector.shape_cast %207 : vector<2x8xf32> to vector<2x8x1xf32>
    %209 = vector.broadcast %208 : vector<2x8x1xf32> to vector<2x8x8xf32>
    %210 = arith.subf %206, %209 : vector<2x8x8xf32>
    %211 = math.exp %210 : vector<2x8x8xf32>
    %cst_72 = arith.constant dense<0.000000e+00> : vector<2x8xf32>
    %212 = vector.multi_reduction <add>, %211, %cst_72 [2] : vector<2x8x8xf32> to vector<2x8xf32>
    %213 = vector.shape_cast %212 : vector<2x8xf32> to vector<2x8x1xf32>
    %214 = vector.broadcast %213 : vector<2x8x1xf32> to vector<2x8x8xf32>
    %215 = arith.divf %211, %214 : vector<2x8x8xf32>
    "tpu.trace_start"() <{level = 10 : i32, message = "bqk,bkd->bqd"}> : () -> ()
    %cst_73 = arith.constant dense<0.000000e+00> : vector<2x8x8xf32>
    %216 = tpu.matmul %215, %203, %cst_73 {dimension_numbers = #tpu.dot_dimension_numbers<[2], [1], [1], [2], [0, 0, 0, 1, 1, 2], [0], [0]>} : vector<2x8x8xf32>, vector<2x8x8xf32>, vector<2x8x8xf32> -> vector<2x8x8xf32>
    "tpu.trace_stop"() : () -> ()
    %217 = vector.shape_cast %216 : vector<2x8x8xf32> to vector<16x8xf32>
    %218 = vector.extract_strided_slice %197 {offsets = [0, 8], sizes = [16, 8], strides = [1, 1]} : vector<16x128xf32> to vector<16x8xf32>
    %219 = vector.shape_cast %218 : vector<16x8xf32> to vector<2x8x8xf32>
    %220 = vector.extract_strided_slice %197 {offsets = [0, 40], sizes = [16, 8], strides = [1, 1]} : vector<16x128xf32> to vector<16x8xf32>
    %221 = vector.shape_cast %220 : vector<16x8xf32> to vector<2x8x8xf32>
    %222 = vector.extract_strided_slice %197 {offsets = [0, 72], sizes = [16, 8], strides = [1, 1]} : vector<16x128xf32> to vector<16x8xf32>
    %223 = vector.shape_cast %222 : vector<16x8xf32> to vector<2x8x8xf32>
    "tpu.trace_start"() <{level = 10 : i32, message = "bqd,bkd->bqk"}> : () -> ()
    %cst_74 = arith.constant dense<0.000000e+00> : vector<2x8x8xf32>
    %224 = tpu.matmul %219, %221, %cst_74 {dimension_numbers = #tpu.dot_dimension_numbers<[2], [2], [1], [1], [0, 0, 0, 1, 1, 1], [0], [0]>} : vector<2x8x8xf32>, vector<2x8x8xf32>, vector<2x8x8xf32> -> vector<2x8x8xf32>
    "tpu.trace_stop"() : () -> ()
    %225 = vector.broadcast %7 : vector<2x1x8xf32> to vector<2x8x8xf32>
    %226 = arith.addf %224, %225 : vector<2x8x8xf32>
    %cst_75 = arith.constant dense<0xFF800000> : vector<2x8xf32>
    %227 = vector.multi_reduction <maximumf>, %226, %cst_75 [2] : vector<2x8x8xf32> to vector<2x8xf32>
    %228 = vector.shape_cast %227 : vector<2x8xf32> to vector<2x8x1xf32>
    %229 = vector.broadcast %228 : vector<2x8x1xf32> to vector<2x8x8xf32>
    %230 = arith.subf %226, %229 : vector<2x8x8xf32>
    %231 = math.exp %230 : vector<2x8x8xf32>
    %cst_76 = arith.constant dense<0.000000e+00> : vector<2x8xf32>
    %232 = vector.multi_reduction <add>, %231, %cst_76 [2] : vector<2x8x8xf32> to vector<2x8xf32>
    %233 = vector.shape_cast %232 : vector<2x8xf32> to vector<2x8x1xf32>
    %234 = vector.broadcast %233 : vector<2x8x1xf32> to vector<2x8x8xf32>
    %235 = arith.divf %231, %234 : vector<2x8x8xf32>
    "tpu.trace_start"() <{level = 10 : i32, message = "bqk,bkd->bqd"}> : () -> ()
    %cst_77 = arith.constant dense<0.000000e+00> : vector<2x8x8xf32>
    %236 = tpu.matmul %235, %223, %cst_77 {dimension_numbers = #tpu.dot_dimension_numbers<[2], [1], [1], [2], [0, 0, 0, 1, 1, 2], [0], [0]>} : vector<2x8x8xf32>, vector<2x8x8xf32>, vector<2x8x8xf32> -> vector<2x8x8xf32>
    "tpu.trace_stop"() : () -> ()
    %237 = vector.shape_cast %236 : vector<2x8x8xf32> to vector<16x8xf32>
    %238 = vector.extract_strided_slice %197 {offsets = [0, 16], sizes = [16, 8], strides = [1, 1]} : vector<16x128xf32> to vector<16x8xf32>
    %239 = vector.shape_cast %238 : vector<16x8xf32> to vector<2x8x8xf32>
    %240 = vector.extract_strided_slice %197 {offsets = [0, 48], sizes = [16, 8], strides = [1, 1]} : vector<16x128xf32> to vector<16x8xf32>
    %241 = vector.shape_cast %240 : vector<16x8xf32> to vector<2x8x8xf32>
    %242 = vector.extract_strided_slice %197 {offsets = [0, 80], sizes = [16, 8], strides = [1, 1]} : vector<16x128xf32> to vector<16x8xf32>
    %243 = vector.shape_cast %242 : vector<16x8xf32> to vector<2x8x8xf32>
    "tpu.trace_start"() <{level = 10 : i32, message = "bqd,bkd->bqk"}> : () -> ()
    %cst_78 = arith.constant dense<0.000000e+00> : vector<2x8x8xf32>
    %244 = tpu.matmul %239, %241, %cst_78 {dimension_numbers = #tpu.dot_dimension_numbers<[2], [2], [1], [1], [0, 0, 0, 1, 1, 1], [0], [0]>} : vector<2x8x8xf32>, vector<2x8x8xf32>, vector<2x8x8xf32> -> vector<2x8x8xf32>
    "tpu.trace_stop"() : () -> ()
    %245 = vector.broadcast %7 : vector<2x1x8xf32> to vector<2x8x8xf32>
    %246 = arith.addf %244, %245 : vector<2x8x8xf32>
    %cst_79 = arith.constant dense<0xFF800000> : vector<2x8xf32>
    %247 = vector.multi_reduction <maximumf>, %246, %cst_79 [2] : vector<2x8x8xf32> to vector<2x8xf32>
    %248 = vector.shape_cast %247 : vector<2x8xf32> to vector<2x8x1xf32>
    %249 = vector.broadcast %248 : vector<2x8x1xf32> to vector<2x8x8xf32>
    %250 = arith.subf %246, %249 : vector<2x8x8xf32>
    %251 = math.exp %250 : vector<2x8x8xf32>
    %cst_80 = arith.constant dense<0.000000e+00> : vector<2x8xf32>
    %252 = vector.multi_reduction <add>, %251, %cst_80 [2] : vector<2x8x8xf32> to vector<2x8xf32>
    %253 = vector.shape_cast %252 : vector<2x8xf32> to vector<2x8x1xf32>
    %254 = vector.broadcast %253 : vector<2x8x1xf32> to vector<2x8x8xf32>
    %255 = arith.divf %251, %254 : vector<2x8x8xf32>
    "tpu.trace_start"() <{level = 10 : i32, message = "bqk,bkd->bqd"}> : () -> ()
    %cst_81 = arith.constant dense<0.000000e+00> : vector<2x8x8xf32>
    %256 = tpu.matmul %255, %243, %cst_81 {dimension_numbers = #tpu.dot_dimension_numbers<[2], [1], [1], [2], [0, 0, 0, 1, 1, 2], [0], [0]>} : vector<2x8x8xf32>, vector<2x8x8xf32>, vector<2x8x8xf32> -> vector<2x8x8xf32>
    "tpu.trace_stop"() : () -> ()
    %257 = vector.shape_cast %256 : vector<2x8x8xf32> to vector<16x8xf32>
    %258 = vector.extract_strided_slice %197 {offsets = [0, 24], sizes = [16, 8], strides = [1, 1]} : vector<16x128xf32> to vector<16x8xf32>
    %259 = vector.shape_cast %258 : vector<16x8xf32> to vector<2x8x8xf32>
    %260 = vector.extract_strided_slice %197 {offsets = [0, 56], sizes = [16, 8], strides = [1, 1]} : vector<16x128xf32> to vector<16x8xf32>
    %261 = vector.shape_cast %260 : vector<16x8xf32> to vector<2x8x8xf32>
    %262 = vector.extract_strided_slice %197 {offsets = [0, 88], sizes = [16, 8], strides = [1, 1]} : vector<16x128xf32> to vector<16x8xf32>
    %263 = vector.shape_cast %262 : vector<16x8xf32> to vector<2x8x8xf32>
    "tpu.trace_start"() <{level = 10 : i32, message = "bqd,bkd->bqk"}> : () -> ()
    %cst_82 = arith.constant dense<0.000000e+00> : vector<2x8x8xf32>
    %264 = tpu.matmul %259, %261, %cst_82 {dimension_numbers = #tpu.dot_dimension_numbers<[2], [2], [1], [1], [0, 0, 0, 1, 1, 1], [0], [0]>} : vector<2x8x8xf32>, vector<2x8x8xf32>, vector<2x8x8xf32> -> vector<2x8x8xf32>
    "tpu.trace_stop"() : () -> ()
    %265 = vector.broadcast %7 : vector<2x1x8xf32> to vector<2x8x8xf32>
    %266 = arith.addf %264, %265 : vector<2x8x8xf32>
    %cst_83 = arith.constant dense<0xFF800000> : vector<2x8xf32>
    %267 = vector.multi_reduction <maximumf>, %266, %cst_83 [2] : vector<2x8x8xf32> to vector<2x8xf32>
    %268 = vector.shape_cast %267 : vector<2x8xf32> to vector<2x8x1xf32>
    %269 = vector.broadcast %268 : vector<2x8x1xf32> to vector<2x8x8xf32>
    %270 = arith.subf %266, %269 : vector<2x8x8xf32>
    %271 = math.exp %270 : vector<2x8x8xf32>
    %cst_84 = arith.constant dense<0.000000e+00> : vector<2x8xf32>
    %272 = vector.multi_reduction <add>, %271, %cst_84 [2] : vector<2x8x8xf32> to vector<2x8xf32>
    %273 = vector.shape_cast %272 : vector<2x8xf32> to vector<2x8x1xf32>
    %274 = vector.broadcast %273 : vector<2x8x1xf32> to vector<2x8x8xf32>
    %275 = arith.divf %271, %274 : vector<2x8x8xf32>
    "tpu.trace_start"() <{level = 10 : i32, message = "bqk,bkd->bqd"}> : () -> ()
    %cst_85 = arith.constant dense<0.000000e+00> : vector<2x8x8xf32>
    %276 = tpu.matmul %275, %263, %cst_85 {dimension_numbers = #tpu.dot_dimension_numbers<[2], [1], [1], [2], [0, 0, 0, 1, 1, 2], [0], [0]>} : vector<2x8x8xf32>, vector<2x8x8xf32>, vector<2x8x8xf32> -> vector<2x8x8xf32>
    "tpu.trace_stop"() : () -> ()
    %277 = vector.shape_cast %276 : vector<2x8x8xf32> to vector<16x8xf32>
    %278 = tpu.concatenate %217, %237, %257, %277 in 1 : vector<16x8xf32>, vector<16x8xf32>, vector<16x8xf32>, vector<16x8xf32> -> vector<16x32xf32>
    %c192 = arith.constant 192 : index
    %c0_86 = arith.constant 0 : index
    %279 = vector.load %arg3[%c192, %c0_86] : memref<320x128xf32, #tpu.memory_space<vmem>>, vector<32x32xf32>
    %cst_87 = arith.constant dense<0.000000e+00> : vector<16x32xf32>
    %280 = tpu.matmul %278, %279, %cst_87 {dimension_numbers = #tpu.dot_dimension_numbers<[1], [0], [0], [1], [0, 0, 1, 1], [], []>} : vector<16x32xf32>, vector<32x32xf32>, vector<16x32xf32> -> vector<16x32xf32>
    %281 = arith.addf %160, %280 : vector<16x32xf32>
    %282 = vector.broadcast %167 : vector<1x32xf32> to vector<16x32xf32>
    %283 = arith.addf %281, %282 : vector<16x32xf32>
    %cst_88 = arith.constant dense<0.000000e+00> : vector<16xf32>
    %284 = vector.multi_reduction <add>, %283, %cst_88 [1] : vector<16x32xf32> to vector<16xf32>
    %285 = vector.shape_cast %284 : vector<16xf32> to vector<16x1xf32>
    %cst_89 = arith.constant 3.200000e+01 : f32
    %286 = vector.broadcast %cst_89 : f32 to vector<16x1xf32>
    %287 = arith.divf %285, %286 : vector<16x1xf32>
    %288 = vector.broadcast %287 : vector<16x1xf32> to vector<16x32xf32>
    %289 = arith.subf %283, %288 : vector<16x32xf32>
    %290 = arith.mulf %289, %289 : vector<16x32xf32>
    %cst_90 = arith.constant dense<0.000000e+00> : vector<16xf32>
    %291 = vector.multi_reduction <add>, %290, %cst_90 [1] : vector<16x32xf32> to vector<16xf32>
    %292 = vector.shape_cast %291 : vector<16xf32> to vector<16x1xf32>
    %cst_91 = arith.constant 3.200000e+01 : f32
    %293 = vector.broadcast %cst_91 : f32 to vector<16x1xf32>
    %294 = arith.divf %292, %293 : vector<16x1xf32>
    %295 = vector.broadcast %287 : vector<16x1xf32> to vector<16x32xf32>
    %296 = arith.subf %283, %295 : vector<16x32xf32>
    %cst_92 = arith.constant 9.99999974E-6 : f32
    %297 = vector.broadcast %cst_92 : f32 to vector<16x1xf32>
    %298 = arith.addf %294, %297 : vector<16x1xf32>
    %299 = math.rsqrt %298 : vector<16x1xf32>
    %300 = vector.broadcast %299 : vector<16x1xf32> to vector<16x32xf32>
    %301 = arith.mulf %296, %300 : vector<16x32xf32>
    %302 = vector.broadcast %168 : vector<1x32xf32> to vector<16x32xf32>
    %303 = arith.mulf %301, %302 : vector<16x32xf32>
    %304 = vector.broadcast %169 : vector<1x32xf32> to vector<16x32xf32>
    %305 = arith.addf %303, %304 : vector<16x32xf32>
    %c224 = arith.constant 224 : index
    %c0_93 = arith.constant 0 : index
    %306 = vector.load %arg3[%c224, %c0_93] : memref<320x128xf32, #tpu.memory_space<vmem>>, vector<32x64xf32>
    %c256 = arith.constant 256 : index
    %c0_94 = arith.constant 0 : index
    %307 = vector.load %arg3[%c256, %c0_94] : memref<320x128xf32, #tpu.memory_space<vmem>>, vector<64x32xf32>
    %cst_95 = arith.constant dense<0.000000e+00> : vector<16x64xf32>
    %308 = tpu.matmul %305, %306, %cst_95 {dimension_numbers = #tpu.dot_dimension_numbers<[1], [0], [0], [1], [0, 0, 1, 1], [], []>} : vector<16x32xf32>, vector<32x64xf32>, vector<16x64xf32> -> vector<16x64xf32>
    %309 = vector.broadcast %170 : vector<1x64xf32> to vector<16x64xf32>
    %310 = arith.addf %308, %309 : vector<16x64xf32>
    %cst_96 = arith.constant 0.000000e+00 : f32
    %311 = vector.broadcast %cst_96 : f32 to vector<16x64xf32>
    %312 = arith.maximumf %310, %311 : vector<16x64xf32>
    %cst_97 = arith.constant dense<0.000000e+00> : vector<16x32xf32>
    %313 = tpu.matmul %312, %307, %cst_97 {dimension_numbers = #tpu.dot_dimension_numbers<[1], [0], [0], [1], [0, 0, 1, 1], [], []>} : vector<16x64xf32>, vector<64x32xf32>, vector<16x32xf32> -> vector<16x32xf32>
    %314 = arith.addf %283, %313 : vector<16x32xf32>
    %315 = vector.broadcast %171 : vector<1x32xf32> to vector<16x32xf32>
    %316 = arith.addf %314, %315 : vector<16x32xf32>
    %c1_98 = arith.constant 1 : index
    %c0_99 = arith.constant 0 : index
    %c0_100 = arith.constant 0 : index
    %317 = vector.load %arg5[%c1_98, %c0_99, %c0_100] : memref<3x16x32xf32, #tpu.memory_space<vmem>>, vector<1x16x32xf32>
    %318 = vector.shape_cast %317 : vector<1x16x32xf32> to vector<16x32xf32>
    %319 = vector.shape_cast %316 : vector<16x32xf32> to vector<1x16x32xf32>
    tpu.vector_store %arg5[%c1_98, %c0_99, %c0_100], %319 {strides = array<i32>} : memref<3x16x32xf32, #tpu.memory_space<vmem>>, vector<1x16x32xf32>,
    %c16 = arith.constant 16 : index
    %c0_101 = arith.constant 0 : index
    %320 = vector.load %arg4[%c16, %c0_101] : memref<18x128xf32, #tpu.memory_space<vmem>>, vector<1x32xf32>
    %c17 = arith.constant 17 : index
    %c0_102 = arith.constant 0 : index
    %321 = vector.load %arg4[%c17, %c0_102] : memref<18x128xf32, #tpu.memory_space<vmem>>, vector<1x32xf32>
    %cst_103 = arith.constant dense<0.000000e+00> : vector<16xf32>
    %322 = vector.multi_reduction <add>, %316, %cst_103 [1] : vector<16x32xf32> to vector<16xf32>
    %323 = vector.shape_cast %322 : vector<16xf32> to vector<16x1xf32>
    %cst_104 = arith.constant 3.200000e+01 : f32
    %324 = vector.broadcast %cst_104 : f32 to vector<16x1xf32>
    %325 = arith.divf %323, %324 : vector<16x1xf32>
    %326 = vector.broadcast %325 : vector<16x1xf32> to vector<16x32xf32>
    %327 = arith.subf %316, %326 : vector<16x32xf32>
    %328 = arith.mulf %327, %327 : vector<16x32xf32>
    %cst_105 = arith.constant dense<0.000000e+00> : vector<16xf32>
    %329 = vector.multi_reduction <add>, %328, %cst_105 [1] : vector<16x32xf32> to vector<16xf32>
    %330 = vector.shape_cast %329 : vector<16xf32> to vector<16x1xf32>
    %cst_106 = arith.constant 3.200000e+01 : f32
    %331 = vector.broadcast %cst_106 : f32 to vector<16x1xf32>
    %332 = arith.divf %330, %331 : vector<16x1xf32>
    %333 = vector.broadcast %325 : vector<16x1xf32> to vector<16x32xf32>
    %334 = arith.subf %316, %333 : vector<16x32xf32>
    %cst_107 = arith.constant 9.99999974E-6 : f32
    %335 = vector.broadcast %cst_107 : f32 to vector<16x1xf32>
    %336 = arith.addf %332, %335 : vector<16x1xf32>
    %337 = math.rsqrt %336 : vector<16x1xf32>
    %338 = vector.broadcast %337 : vector<16x1xf32> to vector<16x32xf32>
    %339 = arith.mulf %334, %338 : vector<16x32xf32>
    %340 = vector.broadcast %320 : vector<1x32xf32> to vector<16x32xf32>
    %341 = arith.mulf %339, %340 : vector<16x32xf32>
    %342 = vector.broadcast %321 : vector<1x32xf32> to vector<16x32xf32>
    %343 = arith.addf %341, %342 : vector<16x32xf32>
    %c2_108 = arith.constant 2 : index
    %c0_109 = arith.constant 0 : index
    %c0_110 = arith.constant 0 : index
    %344 = vector.load %arg5[%c2_108, %c0_109, %c0_110] : memref<3x16x32xf32, #tpu.memory_space<vmem>>, vector<1x16x32xf32>
    %345 = vector.shape_cast %344 : vector<1x16x32xf32> to vector<16x32xf32>
    %346 = vector.shape_cast %343 : vector<16x32xf32> to vector<1x16x32xf32>
    tpu.vector_store %arg5[%c2_108, %c0_109, %c0_110], %346 {strides = array<i32>} : memref<3x16x32xf32, #tpu.memory_space<vmem>>, vector<1x16x32xf32>,
    return
  }
}

</mosaic_0001>

<bundles_post_ra>
// kernel: fwd.1
= control target key start
LH: loop header
LB: loop body
LE: loop exit
PB: predicated region body
PF: predicated region fallthrough
CT: control target
= control target key end

     0   :  { %vm62_vm0 = vcmask 261120   ;;  %v4380_v40 = vmov 0.0   ;;  %vm4381_vm1 = vmmov 0   ;;  %s4382_s13 = smov 96   ;;  %vm206_vm2 = vcmask 64512   ;;  %s4385_s16 = smov 88   ;;  %s5062_s0 = inlined_call_operand.vmem [shape: f32[2,8,32], index: 0, kind: input, shape index: {}]   ;;  %s5063_s1 = inlined_call_operand.vmem [shape: f32[2,8,32], index: 1, kind: input, shape index: {}]   ;;  %s5064_s3 = inlined_call_operand.vmem [shape: f32[320,128], index: 3, kind: input, shape index: {}]   ;;  %s5065_s4 = inlined_call_operand.vmem [shape: f32[18,128], index: 4, kind: input, shape index: {}]   ;;  %s5066_s2 = inlined_call_operand.vmem [shape: f32[2,8], index: 2, kind: input, shape index: {}]   ;;  %s5067_s5 = inlined_call_operand.vmem [shape: f32[3,16,32], index: 5, kind: output, shape index: {}]  }
   0x1   :  { %v20_v0 = vld [vmem:[%s5062_s0] sm:$0xff]  ;;  %v21_v2 = vld [vmem:[%s5062_s0 + $0x8] sm:$0xff]  ;;  %v104_v20 = vld [vmem:[%s5064_s3 + $0x10] sm:$0xff]  ;;  %3956 = vmatprep.subr.mxu0 %v4380_v40  ;;  %3958 = vmatprep.mubr.msk.f32.mxu0 %vm4381_vm1, %v4380_v40  ;;  %v4383_v48 = vmov 1966171168   ;;  %v39_v50 = vlaneseq  ;;  %s4386_s17 = smov 120  }
   0x2   :  { %v22_v1 = vld [vmem:[%s5063_s1] sm:$0xff]  ;;  %v23_v4 = vld [vmem:[%s5063_s1 + $0x8] sm:$0xff]  ;;  %v105_v22 = vld [vmem:[%s5064_s3 + $0x18] sm:$0xff]  ;;  %v37_v49 = vunpack.c.l.s4 %v4383_v48  ;;  %s4387_s18 = smov 56   ;;  %s4388_s19 = smov 80   ;;  %vm1551_vm3 = vcmask 195584  }
   0x3   :  { %v4436_v3 = vadd.f32 %v22_v1, %v20_v0  ;;  %v4441_v5 = vadd.f32 %v23_v4, %v21_v2  ;;  %v102_v18 = vld [vmem:[%s5064_s3] sm:$0xff]  ;;  %v103_v19 = vld [vmem:[%s5064_s3 + $0x8] sm:$0xff]  ;;  %v4203_v23 = vpack.c.bf16 %v105_v22, %v104_v20  ;;  %v40_v52 = vshrl.u32 %v39_v50, 7  ;;  %s4389_s20 = smov 112   ;;  %s4390_s21 = smov 48  }
   0x4   :  { %v4199_v21 = vpack.c.bf16 %v103_v19, %v102_v18  ;;  %v3729_v31 = vld [vmem:[%s5065_s4] ss:$0 sm:$0xff]  ;;  %v3730_v33 = vld [vmem:[%s5065_s4 + $0x1] ss:$0 sm:$0xff]  ;;  %v3731_v41 = vld [vmem:[%s5065_s4 + $0x2] ss:$0 sm:$0xff]  ;;  %v38_v51 = vunpack.c.0.s8 %v37_v49 }
   0x5   :  { %v63_v6 = vsel %vm62_vm0, %v4436_v3, 0.0  ;;  %v66_v7 = vsel %vm62_vm0, %v4441_v5, 0.0  ;;  %v3728_v54 = vld.sshfl [vmem:[%s5066_s2] sm:$0x11 pattern:$0x75316420] }
   0x6   :  { %64 = vadd.xlane.f32.xlu0 %v63_v6  ;;  %4200 = vmatprep.subr.bf16.mxu1 %v4199_v21  ;;  %v41_v53 = vsub.s32 %v38_v51, %v40_v52  ;;  %v35_v56 = vcombine.high %v3728_v54, %v3728_v54  ;;  %v195_v58 = vsub.s32 0, %v40_v52  ;;  %s4384_s2 = smov 64   ;;  %s4391_s22 = smov 72   ;;  %vm1548_vm4 = vcmask 130048  }
   0x7   :  { %4202 = vmatpush3.bf16.msra.mxu1 %v4199_v21  ;;  %s4392_s23 = smov 104   ;;  %s4393_s24 = smov 40   ;;  %vm1784_vm5 = vcmask 523264  }
   0x8   :  { %4204 = vmatprep.subr.bf16.mxu1 %v4203_v23  ;;  %v42_v55 = vrot.slane %v3728_v54, %v41_v53  ;;  %v49_v59 = vrot.slane %v35_v56, %v41_v53  ;;  %s4394_s25 = smov 8   ;;  %s4395_s0 = smov 16  }
   0x9   :  { %s4396_s8 = smov 24  }
   0xa   :  { %67 = vadd.xlane.f32.xlu0 %v66_v7  ;;  %v52_v57 = vmul.f32 -1e+09, %v42_v55  ;;  %v53_v61 = vmul.f32 -1e+09, %v49_v59 }
   0xb   :  { %4206 = vmatpush3.bf16.msra.mxu1 %v4203_v23 }
   0xc   :  { %3946 = vmatprep.subr.mxu1 %v4380_v40  ;;  %v4503_v60 = vrot.slane %v52_v57, %v195_v58  ;;  %v4506_v1 = vrot.slane %v53_v61, %v195_v58 }
  0x93   :  { %v65_v8 = vpop.xlane.xlu0 %64 }
  0x94   :  { %v70_v9 = vmul.f32 0.03125, %v65_v8 }
  0x96   :  { %v72_v10 = vsub.f32 %v4436_v3, %v70_v9 }
  0x97   :  { %v68_v11 = vpop.xlane.xlu0 %67 }
  0x98   :  { %v71_v12 = vmul.f32 0.03125, %v68_v11  ;;  %v74_v13 = vmul.f32 %v72_v10, %v72_v10 }
  0x9a   :  { %v73_v14 = vsub.f32 %v4441_v5, %v71_v12  ;;  %v76_v15 = vsel %vm62_vm0, %v74_v13, 0.0 }
  0x9b   :  { %77 = vadd.xlane.f32.xlu1 %v76_v15 }
  0x9c   :  { %v75_v16 = vmul.f32 %v73_v14, %v73_v14 }
  0x9e   :  { %v79_v17 = vsel %vm62_vm0, %v75_v16, 0.0 }
  0x9f   :  { %80 = vadd.xlane.f32.xlu1 %v79_v17 }
 0x128   :  { %v78_v24 = vpop.xlane.xlu1 %77 }
 0x129   :  { %v82_v25 = vmul.f32 0.03125, %v78_v24 }
 0x12b   :  { %v84_v26 = vadd.f32 1e-05, %v82_v25 }
 0x12c   :  { %v81_v27 = vpop.xlane.xlu1 %80 }
 0x12d   :  { %4296 = vrsqrt.f32 %v84_v26  ;;  %v83_v28 = vmul.f32 0.03125, %v81_v27 }
 0x12f   :  { %v85_v29 = vadd.f32 1e-05, %v83_v28 }
 0x131   :  { %4298 = vrsqrt.f32 %v85_v29 }
 0x137   :  { %v4297_v30 = vpop.eup %4296 }
 0x138   :  { %v88_v32 = vmul.f32 %v4297_v30, %v72_v10 }
 0x13a   :  { %v94_v34 = vmul.f32 %v3729_v31, %v88_v32 }
 0x13b   :  { %v4299_v35 = vpop.eup %4298 }
 0x13c   :  { %v89_v36 = vmul.f32 %v4299_v35, %v73_v14  ;;  %v100_v37 = vadd.f32 %v3730_v33, %v94_v34 }
 0x13e   :  { %v95_v38 = vmul.f32 %v3729_v31, %v89_v36  ;;  %3943 = vmatprep.mubr.msk.f32.mxu1 %vm62_vm0, %v100_v37 }
 0x140   :  { %v101_v39 = vadd.f32 %v3730_v33, %v95_v38 }
 0x142   :  { %3944 = vmatmul.mubr.msk.f32.vlgmr.msra.gmra.mrb[0].mxu1 %vm62_vm0, %v101_v39 }
 0x143   :  { %3948 = vmatprep.mubr.msk.f32.mxu1 %vm4381_vm1, %v4380_v40 }
 0x215   :  { %v3945_v42 = vpop.f32.mrb[0].mxu1 }
 0x216   :  { %v4480_v43 = vadd.f32 %v3945_v42, %v3731_v41  ;;  %v182_v44 = vpop.f32.mrb[1].mxu1 }
 0x217   :  { %v4482_v45 = vadd.f32 %v3731_v41, %v182_v44 }
 0x218   :  { %282 = vrot.lane.b32.xlu1 %v4480_v43, %s4382_s13 }
 0x219   :  { %204 = vrot.lane.b32.xlu0 %v4482_v45, %s4382_s13 }
 0x28a   :  { %v283_v47 = vpop.permute.xlu1 %282 }
 0x28b   :  { %v205_v46 = vpop.permute.xlu0 %204 }
 0x28c   :  { %3947 = vmatpush3.xpose.msk.msra.mxu1 %vm206_vm2, %v205_v46 }
 0x28d   :  { %3951 = vmatprep.subr.mxu1 %v4380_v40 }
 0x28f   :  { %3949 = vmatmul.mubr.msk.f32.vlgmr.msra.gmra.mrb[2].mxu1 %vm206_vm2, %v4482_v45 }
 0x290   :  { %3952 = vmatpush3.xpose.msk.msra.mxu1 %vm206_vm2, %v283_v47  ;;  %3953 = vmatprep.mubr.msk.f32.mxu1 %vm4381_vm1, %v4380_v40 }
 0x291   :  { %3961 = vmatprep.subr.mxu1 %v4380_v40 }
 0x293   :  { %3954 = vmatmul.mubr.msk.f32.vlgmr.msra.gmra.mrb[4].mxu1 %vm206_vm2, %v4480_v43 }
 0x294   :  { %3963 = vmatprep.mubr.msk.f32.mxu1 %vm4381_vm1, %v4380_v40 }
 0x362   :  { %v277_v62 = vpop.f32.mrb[2].mxu1 }
 0x363   :  { %v278_v63 = vadd.f32 %v277_v62, %v4503_v60  ;;  %v3950_v0 = vpop.f32.mrb[3].mxu1 }
 0x365   :  { %v358_v2 = vsel %vm206_vm2, %v278_v63, -inf }
 0x366   :  { %359 = vmax.xlane.f32.xlu1 %v358_v2  ;;  %v354_v4 = vpop.f32.mrb[4].mxu1 }
 0x367   :  { %v355_v6 = vadd.f32 %v354_v4, %v4506_v1  ;;  %v3955_v7 = vpop.f32.mrb[5].mxu1 }
 0x369   :  { %v361_v8 = vsel %vm206_vm2, %v355_v6, -inf }
 0x36a   :  { %362 = vmax.xlane.f32.xlu0 %v361_v8 }
 0x377   :  { %456 = vrot.lane.b32.xlu1 %v4480_v43, %s4384_s2 }
 0x37b   :  { %534 = vrot.lane.b32.xlu1 %v4482_v45, %s4385_s16 }
 0x37f   :  { %612 = vrot.lane.b32.xlu1 %v4480_v43, %s4385_s16 }
 0x380   :  { %380 = vrot.lane.b32.xlu0 %v4482_v45, %s4384_s2 }
 0x3f3   :  { %v360_v9 = vpop.xlane.xlu1 %359 }
 0x3f4   :  { %v364_v10 = vsub.f32 %v278_v63, %v360_v9 }
 0x3f6   :  { %v366_v11 = vmul.f32 1.442695, %v364_v10 }
 0x3f7   :  { %v457_v12 = vpop.permute.xlu1 %456  ;;  %v363_v13 = vpop.xlane.xlu0 %362 }
 0x3f8   :  { %4300 = vpow2.f32 %v366_v11  ;;  %v365_v14 = vsub.f32 %v355_v6, %v363_v13  ;;  %3962 = vmatpush3.msra.mxu1 %v457_v12 }
 0x3f9   :  { %3971 = vmatprep.subr.mxu1 %v4380_v40 }
 0x3fa   :  { %v368_v15 = vmul.f32 1.442695, %v365_v14 }
 0x3fb   :  { %v381_v16 = vpop.permute.xlu0 %380  ;;  %v535_v21 = vpop.permute.xlu1 %534 }
 0x3fc   :  { %4302 = vpow2.f32 %v368_v15  ;;  %3957 = vmatpush3.msra.mxu0 %v381_v16 }
 0x3fd   :  { %3966 = vmatprep.subr.mxu0 %v4380_v40 }
 0x3ff   :  { %v613_v22 = vpop.permute.xlu1 %612 }
 0x402   :  { %v4301_v17 = vpop.eup %4300 }
 0x403   :  { %v370_v18 = vsel %vm206_vm2, %v4301_v17, 0.0 }
 0x404   :  { %371 = vadd.xlane.f32.xlu0 %v370_v18 }
 0x406   :  { %v4303_v19 = vpop.eup %4302 }
 0x407   :  { %v373_v20 = vsel %vm206_vm2, %v4303_v19, 0.0 }
 0x408   :  { %374 = vadd.xlane.f32.xlu1 %v373_v20 }
 0x419   :  { %610 = vrot.lane.b32.xlu1 %v4480_v43, %s4386_s17 }
 0x41a   :  { %532 = vrot.lane.b32.xlu0 %v4482_v45, %s4386_s17 }
 0x491   :  { %v372_v23 = vpop.xlane.xlu0 %371 }
 0x492   :  { %4304 = vrcp.f32 %v372_v23 }
 0x495   :  { %v375_v24 = vpop.xlane.xlu1 %374  ;;  %v533_v29 = vpop.permute.xlu0 %532 }
 0x496   :  { %4306 = vrcp.f32 %v375_v24 }
 0x499   :  { %v611_v30 = vpop.permute.xlu1 %610 }
 0x49c   :  { %v4305_v25 = vpop.eup %4304 }
 0x49d   :  { %v377_v26 = vmul.f32 %v4305_v25, %v4301_v17 }
 0x49f   :  { %3959 = vmatmul.mubr.msk.f32.vlgmr.msra.gmra.mrb[0].mxu0 %vm206_vm2, %v377_v26 }
 0x4a0   :  { %v4307_v27 = vpop.eup %4306  ;;  %3967 = vmatpush3.xpose.msk.msra.mxu0 %vm206_vm2, %v535_v21  ;;  %3968 = vmatprep.mubr.msk.f32.mxu0 %vm4381_vm1, %v4380_v40 }
 0x4a1   :  { %v379_v28 = vmul.f32 %v4307_v27, %v4303_v19  ;;  %3976 = vmatprep.subr.mxu0 %v4380_v40 }
 0x4a3   :  { %3964 = vmatmul.mubr.msk.f32.vlgmr.msra.gmra.mrb[6].mxu1 %vm206_vm2, %v379_v28  ;;  %3969 = vmatmul.mubr.msk.f32.vlgmr.msra.gmra.mrb[2].mxu0 %vm206_vm2, %v533_v29 }
 0x4a4   :  { %3972 = vmatpush3.xpose.msk.msra.mxu1 %vm206_vm2, %v613_v22  ;;  %3973 = vmatprep.mubr.msk.f32.mxu1 %vm4381_vm1, %v4380_v40 }
 0x4a5   :  { %3981 = vmatprep.subr.mxu1 %v4380_v40  ;;  %3978 = vmatprep.mubr.msk.f32.mxu0 %vm4381_vm1, %v4380_v40 }
 0x4a7   :  { %3974 = vmatmul.mubr.msk.f32.vlgmr.msra.gmra.mrb[8].mxu1 %vm206_vm2, %v611_v30 }
 0x4a8   :  { %3983 = vmatprep.mubr.msk.f32.mxu1 %vm4381_vm1, %v4380_v40 }
 0x572   :  { %v4543_v31 = vpop.f32.mrb[0].mxu0 }
 0x573   :  { %v3960_v32 = vpop.f32.mrb[1].mxu0 }
 0x576   :  { %v4545_v33 = vpop.f32.mrb[6].mxu1  ;;  %v606_v34 = vpop.f32.mrb[2].mxu0 }
 0x577   :  { %v607_v35 = vadd.f32 %v606_v34, %v4503_v60  ;;  %v3965_v36 = vpop.f32.mrb[7].mxu1  ;;  %v3970_v37 = vpop.f32.mrb[3].mxu0 }
 0x579   :  { %v688_v38 = vsel %vm206_vm2, %v607_v35, -inf }
 0x57a   :  { %689 = vmax.xlane.f32.xlu0 %v688_v38  ;;  %v684_v39 = vpop.f32.mrb[8].mxu1 }
 0x57b   :  { %v685_v41 = vadd.f32 %v684_v39, %v4506_v1  ;;  %v3975_v42 = vpop.f32.mrb[9].mxu1 }
 0x57d   :  { %v691_v44 = vsel %vm206_vm2, %v685_v41, -inf }
 0x57e   :  { %692 = vmax.xlane.f32.xlu1 %v691_v44 }
 0x58f   :  { %786 = vrot.lane.b32.xlu1 %v4480_v43, %s4387_s18 }
 0x590   :  { %710 = vrot.lane.b32.xlu0 %v4482_v45, %s4387_s18 }
 0x593   :  { %864 = vrot.lane.b32.xlu1 %v4482_v45, %s4388_s19 }
 0x597   :  { %942 = vrot.lane.b32.xlu1 %v4480_v43, %s4388_s19 }
 0x59b   :  { %940 = vrot.lane.b32.xlu1 %v4480_v43, %s4389_s20 }
 0x607   :  { %v690_v46 = vpop.xlane.xlu0 %689 }
 0x608   :  { %v694_v47 = vsub.f32 %v607_v35, %v690_v46 }
 0x60a   :  { %v696_v48 = vmul.f32 1.442695, %v694_v47 }
 0x60b   :  { %v711_v49 = vpop.permute.xlu0 %710  ;;  %v693_v50 = vpop.xlane.xlu1 %692 }
 0x60c   :  { %4308 = vpow2.f32 %v696_v48  ;;  %v695_v51 = vsub.f32 %v685_v41, %v693_v50  ;;  %3977 = vmatpush3.msra.mxu0 %v711_v49 }
 0x60d   :  { %3986 = vmatprep.subr.mxu0 %v4380_v40 }
 0x60e   :  { %v698_v52 = vmul.f32 1.442695, %v695_v51 }
 0x60f   :  { %v787_v53 = vpop.permute.xlu1 %786 }
 0x610   :  { %4310 = vpow2.f32 %v698_v52  ;;  %3982 = vmatpush3.msra.mxu1 %v787_v53 }
 0x611   :  { %3991 = vmatprep.subr.mxu1 %v4380_v40 }
 0x613   :  { %v865_v61 = vpop.permute.xlu1 %864 }
 0x616   :  { %v4309_v54 = vpop.eup %4308 }
 0x617   :  { %v700_v55 = vsel %vm206_vm2, %v4309_v54, 0.0  ;;  %v943_v2 = vpop.permute.xlu1 %942 }
 0x618   :  { %701 = vadd.xlane.f32.xlu0 %v700_v55 }
 0x61a   :  { %v4311_v56 = vpop.eup %4310 }
 0x61b   :  { %v703_v57 = vsel %vm206_vm2, %v4311_v56, 0.0  ;;  %v941_v7 = vpop.permute.xlu1 %940 }
 0x61c   :  { %704 = vadd.xlane.f32.xlu0 %v703_v57 }
 0x632   :  { %862 = vrot.lane.b32.xlu0 %v4482_v45, %s4389_s20 }
 0x6a5   :  { %v702_v58 = vpop.xlane.xlu0 %701 }
 0x6a6   :  { %4312 = vrcp.f32 %v702_v58 }
 0x6a9   :  { %v705_v59 = vpop.xlane.xlu0 %704 }
 0x6aa   :  { %4314 = vrcp.f32 %v705_v59 }
 0x6ad   :  { %v863_v6 = vpop.permute.xlu0 %862 }
 0x6b0   :  { %v4313_v62 = vpop.eup %4312 }
 0x6b1   :  { %v707_v63 = vmul.f32 %v4313_v62, %v4309_v54 }
 0x6b3   :  { %3979 = vmatmul.mubr.msk.f32.vlgmr.msra.gmra.mrb[4].mxu0 %vm206_vm2, %v707_v63 }
 0x6b4   :  { %v4315_v0 = vpop.eup %4314  ;;  %3987 = vmatpush3.xpose.msk.msra.mxu0 %vm206_vm2, %v865_v61  ;;  %3988 = vmatprep.mubr.msk.f32.mxu0 %vm4381_vm1, %v4380_v40 }
 0x6b5   :  { %v709_v4 = vmul.f32 %v4315_v0, %v4311_v56  ;;  %3996 = vmatprep.subr.mxu0 %v4380_v40 }
 0x6b7   :  { %3984 = vmatmul.mubr.msk.f32.vlgmr.msra.gmra.mrb[10].mxu1 %vm206_vm2, %v709_v4  ;;  %3989 = vmatmul.mubr.msk.f32.vlgmr.msra.gmra.mrb[6].mxu0 %vm206_vm2, %v863_v6 }
 0x6b8   :  { %3992 = vmatpush3.xpose.msk.msra.mxu1 %vm206_vm2, %v943_v2  ;;  %3993 = vmatprep.mubr.msk.f32.mxu1 %vm4381_vm1, %v4380_v40 }
 0x6b9   :  { %4001 = vmatprep.subr.mxu1 %v4380_v40  ;;  %3998 = vmatprep.mubr.msk.f32.mxu0 %vm4381_vm1, %v4380_v40 }
 0x6bb   :  { %3994 = vmatmul.mubr.msk.f32.vlgmr.msra.gmra.mrb[12].mxu1 %vm206_vm2, %v941_v7 }
 0x6bc   :  { %4003 = vmatprep.mubr.msk.f32.mxu1 %vm4381_vm1, %v4380_v40 }
 0x786   :  { %v4583_v8 = vpop.f32.mrb[4].mxu0 }
 0x787   :  { %v3980_v9 = vpop.f32.mrb[5].mxu0 }
 0x78a   :  { %v4585_v10 = vpop.f32.mrb[10].mxu1  ;;  %v936_v11 = vpop.f32.mrb[6].mxu0 }
 0x78b   :  { %v937_v12 = vadd.f32 %v936_v11, %v4503_v60  ;;  %v3985_v13 = vpop.f32.mrb[11].mxu1  ;;  %v3990_v14 = vpop.f32.mrb[7].mxu0 }
 0x78d   :  { %v1018_v15 = vsel %vm206_vm2, %v937_v12, -inf }
 0x78e   :  { %1019 = vmax.xlane.f32.xlu0 %v1018_v15  ;;  %v1014_v16 = vpop.f32.mrb[12].mxu1 }
 0x78f   :  { %v1015_v17 = vadd.f32 %v1014_v16, %v4506_v1  ;;  %v3995_v18 = vpop.f32.mrb[13].mxu1  ;;  %v1555_v16 = vld [vmem:[%s5064_s3 + $0x28] sm:$0xff] }
 0x790   :  { %v1556_v18 = vld [vmem:[%s5064_s3 + $0x30] sm:$0xff] }
 0x791   :  { %v1021_v19 = vsel %vm206_vm2, %v1015_v17, -inf }
 0x792   :  { %1022 = vmax.xlane.f32.xlu1 %v1021_v19  ;;  %v1557_v19 = vld [vmem:[%s5064_s3 + $0x38] sm:$0xff] }
 0x7a3   :  { %1116 = vrot.lane.b32.xlu1 %v4480_v43, %s4390_s21 }
 0x7a4   :  { %1040 = vrot.lane.b32.xlu0 %v4482_v45, %s4390_s21 }
 0x7a7   :  { %1194 = vrot.lane.b32.xlu1 %v4482_v45, %s4391_s22 }
 0x7ab   :  { %1272 = vrot.lane.b32.xlu1 %v4480_v43, %s4391_s22 }
 0x7af   :  { %1270 = vrot.lane.b32.xlu1 %v4480_v43, %s4392_s23 }
 0x81b   :  { %v1020_v20 = vpop.xlane.xlu0 %1019 }
 0x81c   :  { %v1024_v21 = vsub.f32 %v937_v12, %v1020_v20  ;;  %v4211_v20 = vpack.c.bf16 %v1557_v19, %v1556_v18  ;;  %v3762_v19 = vld [vmem:[%s5065_s4 + $0x5] ss:$0 sm:$0xff] }
 0x81e   :  { %v1026_v22 = vmul.f32 1.442695, %v1024_v21 }
 0x81f   :  { %v1041_v23 = vpop.permute.xlu0 %1040  ;;  %v1023_v24 = vpop.xlane.xlu1 %1022 }
 0x820   :  { %4316 = vpow2.f32 %v1026_v22  ;;  %v1025_v25 = vsub.f32 %v1015_v17, %v1023_v24  ;;  %3997 = vmatpush3.msra.mxu0 %v1041_v23 }
 0x821   :  { %4006 = vmatprep.subr.mxu0 %v4380_v40 }
 0x822   :  { %v1028_v26 = vmul.f32 1.442695, %v1025_v25 }
 0x823   :  { %v1117_v27 = vpop.permute.xlu1 %1116 }
 0x824   :  { %4318 = vpow2.f32 %v1028_v26  ;;  %4002 = vmatpush3.msra.mxu1 %v1117_v27 }
 0x825   :  { %4011 = vmatprep.subr.mxu1 %v4380_v40 }
 0x827   :  { %v1195_v36 = vpop.permute.xlu1 %1194 }
 0x82a   :  { %v4317_v28 = vpop.eup %4316 }
 0x82b   :  { %v1030_v29 = vsel %vm206_vm2, %v4317_v28, 0.0  ;;  %v1273_v41 = vpop.permute.xlu1 %1272 }
 0x82c   :  { %1031 = vadd.xlane.f32.xlu0 %v1030_v29 }
 0x82e   :  { %v4319_v30 = vpop.eup %4318 }
 0x82f   :  { %v1033_v32 = vsel %vm206_vm2, %v4319_v30, 0.0  ;;  %v1271_v46 = vpop.permute.xlu1 %1270 }
 0x830   :  { %1034 = vadd.xlane.f32.xlu0 %v1033_v32 }
 0x846   :  { %1192 = vrot.lane.b32.xlu0 %v4482_v45, %s4392_s23 }
 0x8b9   :  { %v1032_v34 = vpop.xlane.xlu0 %1031 }
 0x8ba   :  { %4320 = vrcp.f32 %v1032_v34 }
 0x8bd   :  { %v1035_v35 = vpop.xlane.xlu0 %1034 }
 0x8be   :  { %4322 = vrcp.f32 %v1035_v35 }
 0x8c1   :  { %v1193_v44 = vpop.permute.xlu0 %1192 }
 0x8c4   :  { %v4321_v37 = vpop.eup %4320 }
 0x8c5   :  { %v1037_v38 = vmul.f32 %v4321_v37, %v4317_v28 }
 0x8c7   :  { %3999 = vmatmul.mubr.msk.f32.vlgmr.msra.gmra.mrb[8].mxu0 %vm206_vm2, %v1037_v38 }
 0x8c8   :  { %v4323_v39 = vpop.eup %4322  ;;  %4007 = vmatpush3.xpose.msk.msra.mxu0 %vm206_vm2, %v1195_v36  ;;  %4008 = vmatprep.mubr.msk.f32.mxu0 %vm4381_vm1, %v4380_v40 }
 0x8c9   :  { %v1039_v42 = vmul.f32 %v4323_v39, %v4319_v30  ;;  %4016 = vmatprep.subr.mxu0 %v4380_v40 }
 0x8cb   :  { %4004 = vmatmul.mubr.msk.f32.vlgmr.msra.gmra.mrb[14].mxu1 %vm206_vm2, %v1039_v42  ;;  %4009 = vmatmul.mubr.msk.f32.vlgmr.msra.gmra.mrb[10].mxu0 %vm206_vm2, %v1193_v44 }
 0x8cc   :  { %4012 = vmatpush3.xpose.msk.msra.mxu1 %vm206_vm2, %v1273_v41  ;;  %4013 = vmatprep.mubr.msk.f32.mxu1 %vm4381_vm1, %v4380_v40 }
 0x8cd   :  { %4021 = vmatprep.subr.mxu1 %v4380_v40  ;;  %4018 = vmatprep.mubr.msk.f32.mxu0 %vm4381_vm1, %v4380_v40 }
 0x8cf   :  { %4014 = vmatmul.mubr.msk.f32.vlgmr.msra.gmra.mrb[16].mxu1 %vm206_vm2, %v1271_v46 }
 0x8d0   :  { %4023 = vmatprep.mubr.msk.f32.mxu1 %vm4381_vm1, %v4380_v40 }
 0x99a   :  { %v1112_v47 = vpop.f32.mrb[8].mxu0 }
 0x99b   :  { %v4000_v48 = vpop.f32.mrb[9].mxu0 }
 0x99e   :  { %v1188_v49 = vpop.f32.mrb[14].mxu1  ;;  %v1266_v50 = vpop.f32.mrb[10].mxu0 }
 0x99f   :  { %v1267_v51 = vadd.f32 %v1266_v50, %v4503_v60  ;;  %v4005_v52 = vpop.f32.mrb[15].mxu1  ;;  %v4010_v53 = vpop.f32.mrb[11].mxu0 }
 0x9a1   :  { %v1348_v54 = vsel %vm206_vm2, %v1267_v51, -inf }
 0x9a2   :  { %1349 = vmax.xlane.f32.xlu0 %v1348_v54  ;;  %v1344_v55 = vpop.f32.mrb[16].mxu1 }
 0x9a3   :  { %v1345_v56 = vadd.f32 %v1344_v55, %v4506_v1  ;;  %v4015_v57 = vpop.f32.mrb[17].mxu1 }
 0x9a4   :  { %v1685_v57 = vld [vmem:[%s5064_s3 + $0x40] sm:$0xff] }
 0x9a5   :  { %v1351_v58 = vsel %vm206_vm2, %v1345_v56, -inf }
 0x9a6   :  { %1352 = vmax.xlane.f32.xlu1 %v1351_v58  ;;  %v1686_v58 = vld [vmem:[%s5064_s3 + $0x48] sm:$0xff] }
 0x9b7   :  { %1446 = vrot.lane.b32.xlu1 %v4480_v43, %s4393_s24 }
 0x9bb   :  { %1524 = vrot.lane.b32.xlu1 %v4583_v8, %s4394_s25 }
 0x9bf   :  { %1526 = vrot.lane.b32.xlu1 %v4585_v10, %s4394_s25 }
 0x9c3   :  { %1534 = vrot.lane.b32.xlu1 %v1188_v49, %s4395_s0 }
 0xa2f   :  { %v1350_v59 = vpop.xlane.xlu0 %1349 }
 0xa30   :  { %v1354_v61 = vsub.f32 %v1267_v51, %v1350_v59  ;;  %v4215_v59 = vpack.c.bf16 %v1686_v58, %v1685_v57  ;;  %v1923_v57 = vld [vmem:[%s5064_s3 + $0xa8] sm:$0xff] }
 0xa32   :  { %v1356_v62 = vmul.f32 1.442695, %v1354_v61  ;;  %v1687_v61 = vld [vmem:[%s5064_s3 + $0x50] sm:$0xff] }
 0xa33   :  { %v1353_v63 = vpop.xlane.xlu1 %1352 }
 0xa34   :  { %4324 = vpow2.f32 %v1356_v62  ;;  %v1355_v0 = vsub.f32 %v1345_v56, %v1353_v63  ;;  %v1688_v62 = vld [vmem:[%s5064_s3 + $0x58] sm:$0xff] }
 0xa35   :  { %v4219_v63 = vpack.c.bf16 %v1688_v62, %v1687_v61  ;;  %v1925_v61 = vld [vmem:[%s5064_s3 + $0xb8] sm:$0xff] }
 0xa36   :  { %v1358_v2 = vmul.f32 1.442695, %v1355_v0  ;;  %v1689_v0 = vld [vmem:[%s5064_s3 + $0x60] sm:$0xff] }
 0xa37   :  { %v1447_v4 = vpop.permute.xlu1 %1446 }
 0xa38   :  { %4326 = vpow2.f32 %v1358_v2  ;;  %4022 = vmatpush3.msra.mxu1 %v1447_v4  ;;  %v1690_v2 = vld [vmem:[%s5064_s3 + $0x68] sm:$0xff]  ;;  %v1691_v4 = vld [vmem:[%s5064_s3 + $0x70] sm:$0xff] }
 0xa39   :  { %4216 = vmatprep.subr.bf16.mxu1 %v4215_v59 }
 0xa3b   :  { %v1525_v25 = vpop.permute.xlu1 %1524 }
 0xa3c   :  { %v1546_v28 = vsel %vm206_vm2, %v4543_v31, %v1525_v25  ;;  %v3760_v31 = vld [vmem:[%s5065_s4 + $0x3] ss:$0 sm:$0xff] }
 0xa3e   :  { %v4325_v43 = vpop.eup %4324 }
 0xa3f   :  { %v1360_v6 = vsel %vm206_vm2, %v4325_v43, 0.0  ;;  %v1527_v26 = vpop.permute.xlu1 %1526 }
 0xa40   :  { %1361 = vadd.xlane.f32.xlu0 %v1360_v6  ;;  %v1547_v35 = vsel %vm206_vm2, %v4545_v33, %v1527_v26  ;;  %v1692_v6 = vld [vmem:[%s5064_s3 + $0x78] sm:$0xff]  ;;  %v1695_v26 = vld [vmem:[%s5064_s3 + $0x90] sm:$0xff] }
 0xa42   :  { %v4327_v7 = vpop.eup %4326 }
 0xa43   :  { %v1363_v8 = vsel %vm206_vm2, %v4327_v7, 0.0  ;;  %v1535_v29 = vpop.permute.xlu1 %1534 }
 0xa44   :  { %1364 = vadd.xlane.f32.xlu0 %v1363_v8  ;;  %v1550_v36 = vsel %vm1548_vm4, %v1547_v35, %v1535_v29  ;;  %v1693_v8 = vld [vmem:[%s5064_s3 + $0x80] sm:$0xff] }
 0xa45   :  { %v3763_v29 = vld [vmem:[%s5065_s4 + $0x6] ss:$0 sm:$0xff] }
 0xa5a   :  { %1370 = vrot.lane.b32.xlu0 %v4482_v45, %s4393_s24  ;;  %v1554_v45 = vld [vmem:[%s5064_s3 + $0x20] sm:$0xff] }
 0xa5b   :  { %v4207_v17 = vpack.c.bf16 %v1555_v16, %v1554_v45 }
 0xa5e   :  { %1532 = vrot.lane.b32.xlu0 %v1112_v47, %s4395_s0 }
 0xacd   :  { %v1362_v9 = vpop.xlane.xlu0 %1361 }
 0xace   :  { %4328 = vrcp.f32 %v1362_v9  ;;  %v1694_v9 = vld [vmem:[%s5064_s3 + $0x88] sm:$0xff] }
 0xad1   :  { %v1365_v10 = vpop.xlane.xlu0 %1364 }
 0xad2   :  { %4330 = vrcp.f32 %v1365_v10  ;;  %v4231_v10 = vpack.c.bf16 %v1694_v9, %v1693_v8  ;;  %v3769_v8 = vld [vmem:[%s5065_s4 + $0x8] ss:$0 sm:$0xff] }
 0xad5   :  { %v1371_v11 = vpop.permute.xlu0 %1370 }
 0xad6   :  { %4017 = vmatpush3.msra.mxu0 %v1371_v11 }
 0xad7   :  { %4208 = vmatprep.subr.bf16.mxu0 %v4207_v17 }
 0xad8   :  { %v4329_v12 = vpop.eup %4328 }
 0xad9   :  { %v1367_v13 = vmul.f32 %v4329_v12, %v4325_v43  ;;  %v1533_v27 = vpop.permute.xlu0 %1532  ;;  %v4223_v43 = vpack.c.bf16 %v1690_v2, %v1689_v0 }
 0xada   :  { %v1549_v30 = vsel %vm1548_vm4, %v1546_v28, %v1533_v27  ;;  %v1696_v27 = vld [vmem:[%s5064_s3 + $0x98] sm:$0xff] }
 0xadb   :  { %4019 = vmatmul.mubr.msk.f32.vlgmr.msra.gmra.mrb[12].mxu0 %vm206_vm2, %v1367_v13  ;;  %v4235_v28 = vpack.c.bf16 %v1696_v27, %v1695_v26 }
 0xadc   :  { %v4331_v14 = vpop.eup %4330  ;;  %4210 = vmatpush3.bf16.msra.mxu0 %v4207_v17  ;;  %v3761_v17 = vld [vmem:[%s5065_s4 + $0x4] ss:$0 sm:$0xff] }
 0xadd   :  { %v1369_v15 = vmul.f32 %v4331_v14, %v4327_v7  ;;  %4212 = vmatprep.subr.bf16.mxu0 %v4211_v20  ;;  %v4227_v7 = vpack.c.bf16 %v1692_v6, %v1691_v4 }
 0xadf   :  { %4024 = vmatmul.mubr.msk.f32.vlgmr.msra.gmra.mrb[18].mxu1 %vm206_vm2, %v1369_v15 }
 0xae0   :  { %4214 = vmatpush3.bf16.msra.mxu0 %v4211_v20  ;;  %4218 = vmatpush3.bf16.msra.mxu1 %v4215_v59  ;;  %v1924_v59 = vld [vmem:[%s5064_s3 + $0xb0] sm:$0xff] }
 0xae1   :  { %4220 = vmatprep.subr.bf16.mxu1 %v4219_v63  ;;  %4224 = vmatprep.subr.bf16.mxu0 %v4223_v43  ;;  %v4243_v62 = vpack.c.bf16 %v1925_v61, %v1924_v59 }
 0xae4   :  { %4222 = vmatpush3.bf16.msra.mxu1 %v4219_v63 }
 0xbae   :  { %v1442_v21 = vpop.f32.mrb[12].mxu0 }
 0xbaf   :  { %1540 = vrot.lane.b32.xlu0 %v1442_v21, %s4396_s8  ;;  %v4020_v22 = vpop.f32.mrb[13].mxu0 }
 0xbb2   :  { %v1518_v23 = vpop.f32.mrb[18].mxu1 }
 0xbb3   :  { %1542 = vrot.lane.b32.xlu1 %v1518_v23, %s4396_s8  ;;  %v4025_v24 = vpop.f32.mrb[19].mxu1 }
 0xc21   :  { %v1541_v32 = vpop.permute.xlu0 %1540 }
 0xc22   :  { %v1552_v34 = vsel %vm1551_vm3, %v1549_v30, %v1541_v32 }
 0xc23   :  { %4034 = vmatprep.mubr.msk.f32.mxu0 %vm62_vm0, %v1552_v34 }
 0xc25   :  { %v1543_v37 = vpop.permute.xlu1 %1542 }
 0xc26   :  { %v1553_v38 = vsel %vm1551_vm3, %v1550_v36, %v1543_v37 }
 0xc27   :  { %4035 = vmatmul.mubr.msk.f32.vlgmr.msra.gmra.mrb[14].mxu0 %vm62_vm0, %v1553_v38  ;;  %v3768_v38 = vld [vmem:[%s5065_s4 + $0x7] ss:$0 sm:$0xff] }
 0xc28   :  { %4226 = vmatpush3.bf16.msra.mxu0 %v4223_v43 }
 0xc29   :  { %4228 = vmatprep.subr.bf16.mxu0 %v4227_v7 }
 0xc2c   :  { %4230 = vmatpush3.bf16.msra.mxu0 %v4227_v7 }
 0xc2d   :  { %4232 = vmatprep.subr.bf16.mxu0 %v4231_v10 }
 0xc30   :  { %4234 = vmatpush3.bf16.msra.mxu0 %v4231_v10 }
 0xc31   :  { %4236 = vmatprep.subr.bf16.mxu0 %v4235_v28 }
 0xc34   :  { %4238 = vmatpush3.bf16.msra.mxu0 %v4235_v28 }
 0xc35   :  { %4088 = vmatprep.subr.mxu0 %v4380_v40 }
 0xcfa   :  { %v4036_v39 = vpop.f32.mrb[14].mxu0 }
 0xcfb   :  { %v1640_v41 = vadd.f32 %v4036_v39, %v4441_v5  ;;  %v1630_v42 = vpop.f32.mrb[15].mxu0 }
 0xcfc   :  { %v1639_v44 = vadd.f32 %v1630_v42, %v4436_v3 }
 0xcfd   :  { %v4670_v46 = vadd.f32 %v3760_v31, %v1640_v41 }
 0xcfe   :  { %v4672_v33 = vadd.f32 %v3760_v31, %v1639_v44 }
 0xcff   :  { %v1650_v47 = vsel %vm62_vm0, %v4670_v46, 0.0 }
 0xd00   :  { %1651 = vadd.xlane.f32.xlu1 %v1650_v47  ;;  %v1647_v48 = vsel %vm62_vm0, %v4672_v33, 0.0 }
 0xd01   :  { %1648 = vadd.xlane.f32.xlu0 %v1647_v48 }
 0xd8d   :  { %v1652_v49 = vpop.xlane.xlu1 %1651 }
 0xd8e   :  { %v1654_v50 = vmul.f32 0.03125, %v1652_v49  ;;  %v1649_v51 = vpop.xlane.xlu0 %1648 }
 0xd8f   :  { %v1653_v52 = vmul.f32 0.03125, %v1649_v51 }
 0xd90   :  { %v1656_v5 = vsub.f32 %v4670_v46, %v1654_v50 }
 0xd91   :  { %v1655_v3 = vsub.f32 %v4672_v33, %v1653_v52 }
 0xd92   :  { %v1658_v55 = vmul.f32 %v1656_v5, %v1656_v5 }
 0xd93   :  { %v1657_v53 = vmul.f32 %v1655_v3, %v1655_v3 }
 0xd94   :  { %v1662_v56 = vsel %vm62_vm0, %v1658_v55, 0.0 }
 0xd95   :  { %v1659_v54 = vsel %vm62_vm0, %v1657_v53, 0.0 }
 0xd96   :  { %1660 = vadd.xlane.f32.xlu0 %v1659_v54 }
 0xd9a   :  { %1663 = vadd.xlane.f32.xlu0 %v1662_v56  ;;  %v1922_v56 = vld [vmem:[%s5064_s3 + $0xa0] sm:$0xff] }
 0xd9b   :  { %v4239_v58 = vpack.c.bf16 %v1923_v57, %v1922_v56 }
 0xd9d   :  { %4240 = vmatprep.subr.bf16.mxu1 %v4239_v58 }
 0xe23   :  { %v1661_v11 = vpop.xlane.xlu0 %1660 }
 0xe24   :  { %v1665_v12 = vmul.f32 0.03125, %v1661_v11 }
 0xe26   :  { %v1667_v13 = vadd.f32 1e-05, %v1665_v12  ;;  %v3770_v12 = vld [vmem:[%s5065_s4 + $0x9] ss:$0 sm:$0xff] }
 0xe27   :  { %v1664_v14 = vpop.xlane.xlu0 %1663 }
 0xe28   :  { %4332 = vrsqrt.f32 %v1667_v13  ;;  %v1666_v15 = vmul.f32 0.03125, %v1664_v14 }
 0xe2a   :  { %v1668_v45 = vadd.f32 1e-05, %v1666_v15 }
 0xe2c   :  { %4334 = vrsqrt.f32 %v1668_v45 }
 0xe32   :  { %v4333_v16 = vpop.eup %4332 }
 0xe33   :  { %v1671_v18 = vmul.f32 %v4333_v16, %v1655_v3  ;;  %v3771_v16 = vld [vmem:[%s5065_s4 + $0xa] ss:$0 sm:$0xff] }
 0xe35   :  { %v1677_v20 = vmul.f32 %v3761_v17, %v1671_v18 }
 0xe36   :  { %v4335_v21 = vpop.eup %4334 }
 0xe37   :  { %v1672_v22 = vmul.f32 %v4335_v21, %v1656_v5  ;;  %v1683_v23 = vadd.f32 %v3762_v19, %v1677_v20 }
 0xe39   :  { %v1678_v24 = vmul.f32 %v3761_v17, %v1672_v22  ;;  %4045 = vmatprep.mubr.msk.f32.mxu1 %vm62_vm0, %v1683_v23 }
 0xe3b   :  { %v1684_v25 = vadd.f32 %v3762_v19, %v1678_v24 }
 0xe3d   :  { %4046 = vmatmul.mubr.msk.f32.vlgmr.msra.gmra.mrb[20].mxu1 %vm62_vm0, %v1684_v25 }
 0xe3e   :  { %4242 = vmatpush3.bf16.msra.mxu1 %v4239_v58 }
 0xe3f   :  { %4244 = vmatprep.subr.bf16.mxu1 %v4243_v62 }
 0xe42   :  { %4246 = vmatpush3.bf16.msra.mxu1 %v4243_v62 }
 0xe43   :  { %4078 = vmatprep.subr.mxu1 %v4380_v40 }
 0xf10   :  { %v4047_v30 = vpop.f32.mrb[20].mxu1 }
 0xf11   :  { %v1779_v32 = vadd.f32 %v4047_v30, %v3763_v29  ;;  %v1773_v34 = vpop.f32.mrb[21].mxu1 }
 0xf12   :  { %v1774_v35 = vadd.f32 %v3763_v29, %v1773_v34 }
 0xf13   :  { %v1783_v37 = vmax.f32 %v1779_v32, 0.0 }
 0xf14   :  { %v1782_v36 = vmax.f32 %v1774_v35, 0.0 }
 0xf16   :  { %4064 = vmatprep.mubr.msk.f32.mxu0 %vm1784_vm5, %v1782_v36 }
 0xf17   :  { %4065 = vmatmul.mubr.msk.f32.vlgmr.msra.gmra.mrb[16].mxu0 %vm1784_vm5, %v1783_v37 }
 0xf18   :  { %4090 = vmatprep.mubr.msk.f32.mxu0 %vm4381_vm1, %v4380_v40 }
 0xfea   :  { %v4066_v31 = vpop.f32.mrb[16].mxu0 }
 0xfeb   :  { %v1867_v39 = vadd.f32 %v4066_v31, %v4670_v46  ;;  %v1857_v41 = vpop.f32.mrb[17].mxu0 }
 0xfec   :  { %v1866_v42 = vadd.f32 %v1857_v41, %v4672_v33 }
 0xfed   :  { %v4739_v44 = vadd.f32 %v3768_v38, %v1867_v39 }
 0xfee   :  { %v4741_v47 = vadd.f32 %v3768_v38, %v1866_v42 }
 0xfef   :  { %1875 = vst.msk [vmem:[%s5067_s5 + $0x8] sm:$0xff] %vm62_vm0, %v4739_v44  ;;  %v1887_v48 = vsel %vm62_vm0, %v4739_v44, 0.0 }
 0xff0   :  { %1874 = vst.msk [vmem:[%s5067_s5] sm:$0xff] %vm62_vm0, %v4741_v47  ;;  %1888 = vadd.xlane.f32.xlu1 %v1887_v48  ;;  %v1884_v46 = vsel %vm62_vm0, %v4741_v47, 0.0 }
 0xff1   :  { %1885 = vadd.xlane.f32.xlu0 %v1884_v46 }
0x107d   :  { %v1889_v33 = vpop.xlane.xlu1 %1888 }
0x107e   :  { %v1891_v49 = vmul.f32 0.03125, %v1889_v33  ;;  %v1886_v50 = vpop.xlane.xlu0 %1885 }
0x107f   :  { %v1890_v51 = vmul.f32 0.03125, %v1886_v50 }
0x1080   :  { %v1893_v52 = vsub.f32 %v4739_v44, %v1891_v49 }
0x1081   :  { %v1892_v5 = vsub.f32 %v4741_v47, %v1890_v51 }
0x1082   :  { %v1895_v3 = vmul.f32 %v1893_v52, %v1893_v52 }
0x1083   :  { %v1894_v53 = vmul.f32 %v1892_v5, %v1892_v5 }
0x1084   :  { %v1899_v54 = vsel %vm62_vm0, %v1895_v3, 0.0 }
0x1085   :  { %1900 = vadd.xlane.f32.xlu1 %v1899_v54  ;;  %v1896_v55 = vsel %vm62_vm0, %v1894_v53, 0.0 }
0x1086   :  { %1897 = vadd.xlane.f32.xlu0 %v1896_v55 }
0x1112   :  { %v1901_v63 = vpop.xlane.xlu1 %1900 }
0x1113   :  { %v1903_v0 = vmul.f32 0.03125, %v1901_v63  ;;  %v1898_v2 = vpop.xlane.xlu0 %1897 }
0x1114   :  { %v1902_v4 = vmul.f32 0.03125, %v1898_v2 }
0x1115   :  { %v1905_v43 = vadd.f32 1e-05, %v1903_v0 }
0x1116   :  { %v1904_v6 = vadd.f32 1e-05, %v1902_v4 }
0x1117   :  { %4336 = vrsqrt.f32 %v1905_v43 }
0x1118   :  { %4338 = vrsqrt.f32 %v1904_v6 }
0x1121   :  { %v4337_v7 = vpop.eup %4336 }
0x1122   :  { %v4339_v9 = vpop.eup %4338  ;;  %v1909_v10 = vmul.f32 %v4337_v7, %v1893_v52 }
0x1123   :  { %v1908_v11 = vmul.f32 %v4339_v9, %v1892_v5 }
0x1124   :  { %v1915_v13 = vmul.f32 %v3769_v8, %v1909_v10 }
0x1125   :  { %v1914_v14 = vmul.f32 %v3769_v8, %v1908_v11 }
0x1126   :  { %v1921_v45 = vadd.f32 %v3770_v12, %v1915_v13 }
0x1127   :  { %v1920_v15 = vadd.f32 %v3770_v12, %v1914_v14 }
0x1129   :  { %4075 = vmatprep.mubr.msk.f32.mxu1 %vm62_vm0, %v1920_v15 }
0x112a   :  { %4076 = vmatmul.mubr.msk.f32.vlgmr.msra.gmra.mrb[22].mxu1 %vm62_vm0, %v1921_v45 }
0x112b   :  { %4080 = vmatprep.mubr.msk.f32.mxu1 %vm4381_vm1, %v4380_v40 }
0x11fd   :  { %v4077_v17 = vpop.f32.mrb[22].mxu1 }
0x11fe   :  { %v4787_v18 = vadd.f32 %v4077_v17, %v3771_v16  ;;  %v2002_v19 = vpop.f32.mrb[23].mxu1 }
0x11ff   :  { %v4789_v20 = vadd.f32 %v3771_v16, %v2002_v19 }
0x1200   :  { %2089 = vrot.lane.b32.xlu1 %v4787_v18, %s4382_s13 }
0x1201   :  { %2012 = vrot.lane.b32.xlu0 %v4789_v20, %s4382_s13 }
0x1272   :  { %v2090_v22 = vpop.permute.xlu1 %2089 }
0x1273   :  { %v2013_v21 = vpop.permute.xlu0 %2012 }
0x1274   :  { %4079 = vmatpush3.xpose.msk.msra.mxu1 %vm206_vm2, %v2013_v21 }
0x1275   :  { %4083 = vmatprep.subr.mxu1 %v4380_v40 }
0x1277   :  { %4081 = vmatmul.mubr.msk.f32.vlgmr.msra.gmra.mrb[24].mxu1 %vm206_vm2, %v4789_v20 }
0x1278   :  { %4084 = vmatpush3.xpose.msk.msra.mxu1 %vm206_vm2, %v2090_v22  ;;  %4085 = vmatprep.mubr.msk.f32.mxu1 %vm4381_vm1, %v4380_v40 }
0x1279   :  { %4093 = vmatprep.subr.mxu1 %v4380_v40 }
0x127b   :  { %4086 = vmatmul.mubr.msk.f32.vlgmr.msra.gmra.mrb[26].mxu1 %vm206_vm2, %v4787_v18 }
0x127c   :  { %4095 = vmatprep.mubr.msk.f32.mxu1 %vm4381_vm1, %v4380_v40 }
0x134a   :  { %v2084_v23 = vpop.f32.mrb[24].mxu1 }
0x134b   :  { %v2085_v24 = vadd.f32 %v2084_v23, %v4503_v60  ;;  %v4082_v25 = vpop.f32.mrb[25].mxu1 }
0x134d   :  { %v2165_v26 = vsel %vm206_vm2, %v2085_v24, -inf }
0x134e   :  { %2166 = vmax.xlane.f32.xlu1 %v2165_v26  ;;  %v2161_v27 = vpop.f32.mrb[26].mxu1 }
0x134f   :  { %v2162_v28 = vadd.f32 %v2161_v27, %v4506_v1  ;;  %v4087_v29 = vpop.f32.mrb[27].mxu1 }
0x1351   :  { %v2168_v30 = vsel %vm206_vm2, %v2162_v28, -inf }
0x1352   :  { %2169 = vmax.xlane.f32.xlu0 %v2168_v30 }
0x135f   :  { %2263 = vrot.lane.b32.xlu1 %v4787_v18, %s4384_s2 }
0x1363   :  { %2341 = vrot.lane.b32.xlu1 %v4789_v20, %s4385_s16 }
0x1367   :  { %2419 = vrot.lane.b32.xlu1 %v4787_v18, %s4385_s16 }
0x1368   :  { %2187 = vrot.lane.b32.xlu0 %v4789_v20, %s4384_s2 }
0x13db   :  { %v2167_v32 = vpop.xlane.xlu1 %2166 }
0x13dc   :  { %v2171_v34 = vsub.f32 %v2085_v24, %v2167_v32 }
0x13de   :  { %v2173_v35 = vmul.f32 1.442695, %v2171_v34 }
0x13df   :  { %v2264_v36 = vpop.permute.xlu1 %2263  ;;  %v2170_v37 = vpop.xlane.xlu0 %2169 }
0x13e0   :  { %4340 = vpow2.f32 %v2173_v35  ;;  %v2172_v38 = vsub.f32 %v2162_v28, %v2170_v37  ;;  %4094 = vmatpush3.msra.mxu1 %v2264_v36 }
0x13e1   :  { %4103 = vmatprep.subr.mxu1 %v4380_v40 }
0x13e2   :  { %v2175_v31 = vmul.f32 1.442695, %v2172_v38 }
0x13e3   :  { %v2188_v39 = vpop.permute.xlu0 %2187  ;;  %v2342_v33 = vpop.permute.xlu1 %2341 }
0x13e4   :  { %4342 = vpow2.f32 %v2175_v31  ;;  %4089 = vmatpush3.msra.mxu0 %v2188_v39 }
0x13e5   :  { %4098 = vmatprep.subr.mxu0 %v4380_v40 }
0x13e7   :  { %v2420_v49 = vpop.permute.xlu1 %2419 }
0x13ea   :  { %v4341_v41 = vpop.eup %4340 }
0x13eb   :  { %v2177_v42 = vsel %vm206_vm2, %v4341_v41, 0.0 }
0x13ec   :  { %2178 = vadd.xlane.f32.xlu0 %v2177_v42 }
0x13ee   :  { %v4343_v48 = vpop.eup %4342 }
0x13ef   :  { %v2180_v46 = vsel %vm206_vm2, %v4343_v48, 0.0 }
0x13f0   :  { %2181 = vadd.xlane.f32.xlu1 %v2180_v46 }
0x1401   :  { %2417 = vrot.lane.b32.xlu1 %v4787_v18, %s4386_s17 }
0x1402   :  { %2339 = vrot.lane.b32.xlu0 %v4789_v20, %s4386_s17 }
0x1479   :  { %v2179_v50 = vpop.xlane.xlu0 %2178 }
0x147a   :  { %4344 = vrcp.f32 %v2179_v50 }
0x147d   :  { %v2182_v51 = vpop.xlane.xlu1 %2181  ;;  %v2340_v54 = vpop.permute.xlu0 %2339 }
0x147e   :  { %4346 = vrcp.f32 %v2182_v51 }
0x1481   :  { %v2418_v55 = vpop.permute.xlu1 %2417 }
0x1484   :  { %v4345_v52 = vpop.eup %4344 }
0x1485   :  { %v2184_v5 = vmul.f32 %v4345_v52, %v4341_v41 }
0x1487   :  { %4091 = vmatmul.mubr.msk.f32.vlgmr.msra.gmra.mrb[18].mxu0 %vm206_vm2, %v2184_v5 }
0x1488   :  { %v4347_v3 = vpop.eup %4346  ;;  %4099 = vmatpush3.xpose.msk.msra.mxu0 %vm206_vm2, %v2342_v33  ;;  %4100 = vmatprep.mubr.msk.f32.mxu0 %vm4381_vm1, %v4380_v40 }
0x1489   :  { %v2186_v53 = vmul.f32 %v4347_v3, %v4343_v48  ;;  %4108 = vmatprep.subr.mxu0 %v4380_v40 }
0x148b   :  { %4096 = vmatmul.mubr.msk.f32.vlgmr.msra.gmra.mrb[28].mxu1 %vm206_vm2, %v2186_v53  ;;  %4101 = vmatmul.mubr.msk.f32.vlgmr.msra.gmra.mrb[20].mxu0 %vm206_vm2, %v2340_v54 }
0x148c   :  { %4104 = vmatpush3.xpose.msk.msra.mxu1 %vm206_vm2, %v2420_v49  ;;  %4105 = vmatprep.mubr.msk.f32.mxu1 %vm4381_vm1, %v4380_v40 }
0x148d   :  { %4113 = vmatprep.subr.mxu1 %v4380_v40  ;;  %4110 = vmatprep.mubr.msk.f32.mxu0 %vm4381_vm1, %v4380_v40 }
0x148f   :  { %4106 = vmatmul.mubr.msk.f32.vlgmr.msra.gmra.mrb[30].mxu1 %vm206_vm2, %v2418_v55 }
0x1490   :  { %4115 = vmatprep.mubr.msk.f32.mxu1 %vm4381_vm1, %v4380_v40 }
0x155a   :  { %v4843_v56 = vpop.f32.mrb[18].mxu0 }
0x155b   :  { %v4092_v57 = vpop.f32.mrb[19].mxu0 }
0x155e   :  { %v4845_v58 = vpop.f32.mrb[28].mxu1  ;;  %v2413_v59 = vpop.f32.mrb[20].mxu0 }
0x155f   :  { %v2414_v61 = vadd.f32 %v2413_v59, %v4503_v60  ;;  %v4097_v62 = vpop.f32.mrb[29].mxu1  ;;  %v4102_v63 = vpop.f32.mrb[21].mxu0 }
0x1561   :  { %v2495_v0 = vsel %vm206_vm2, %v2414_v61, -inf }
0x1562   :  { %2496 = vmax.xlane.f32.xlu0 %v2495_v0  ;;  %v2491_v2 = vpop.f32.mrb[30].mxu1 }
0x1563   :  { %v2492_v4 = vadd.f32 %v2491_v2, %v4506_v1  ;;  %v4107_v43 = vpop.f32.mrb[31].mxu1 }
0x1565   :  { %v2498_v6 = vsel %vm206_vm2, %v2492_v4, -inf }
0x1566   :  { %2499 = vmax.xlane.f32.xlu1 %v2498_v6 }
0x1577   :  { %2593 = vrot.lane.b32.xlu1 %v4787_v18, %s4387_s18 }
0x1578   :  { %2517 = vrot.lane.b32.xlu0 %v4789_v20, %s4387_s18 }
0x157b   :  { %2671 = vrot.lane.b32.xlu1 %v4789_v20, %s4388_s19 }
0x157f   :  { %2749 = vrot.lane.b32.xlu1 %v4787_v18, %s4388_s19 }
0x1583   :  { %2747 = vrot.lane.b32.xlu1 %v4787_v18, %s4389_s20 }
0x15ef   :  { %v2497_v7 = vpop.xlane.xlu0 %2496 }
0x15f0   :  { %v2501_v8 = vsub.f32 %v2414_v61, %v2497_v7 }
0x15f2   :  { %v2503_v9 = vmul.f32 1.442695, %v2501_v8 }
0x15f3   :  { %v2518_v10 = vpop.permute.xlu0 %2517  ;;  %v2500_v11 = vpop.xlane.xlu1 %2499 }
0x15f4   :  { %4348 = vpow2.f32 %v2503_v9  ;;  %v2502_v12 = vsub.f32 %v2492_v4, %v2500_v11  ;;  %4109 = vmatpush3.msra.mxu0 %v2518_v10 }
0x15f5   :  { %4118 = vmatprep.subr.mxu0 %v4380_v40 }
0x15f6   :  { %v2505_v13 = vmul.f32 1.442695, %v2502_v12 }
0x15f7   :  { %v2594_v14 = vpop.permute.xlu1 %2593 }
0x15f8   :  { %4350 = vpow2.f32 %v2505_v13  ;;  %4114 = vmatpush3.msra.mxu1 %v2594_v14 }
0x15f9   :  { %4123 = vmatprep.subr.mxu1 %v4380_v40 }
0x15fb   :  { %v2672_v22 = vpop.permute.xlu1 %2671 }
0x15fe   :  { %v4349_v15 = vpop.eup %4348 }
0x15ff   :  { %v2507_v45 = vsel %vm206_vm2, %v4349_v15, 0.0  ;;  %v2750_v26 = vpop.permute.xlu1 %2749 }
0x1600   :  { %2508 = vadd.xlane.f32.xlu0 %v2507_v45 }
0x1602   :  { %v4351_v16 = vpop.eup %4350 }
0x1603   :  { %v2510_v17 = vsel %vm206_vm2, %v4351_v16, 0.0  ;;  %v2748_v29 = vpop.permute.xlu1 %2747 }
0x1604   :  { %2511 = vadd.xlane.f32.xlu0 %v2510_v17 }
0x161a   :  { %2669 = vrot.lane.b32.xlu0 %v4789_v20, %s4389_s20 }
0x168d   :  { %v2509_v19 = vpop.xlane.xlu0 %2508 }
0x168e   :  { %4352 = vrcp.f32 %v2509_v19 }
0x1691   :  { %v2512_v21 = vpop.xlane.xlu0 %2511 }
0x1692   :  { %4354 = vrcp.f32 %v2512_v21 }
0x1695   :  { %v2670_v28 = vpop.permute.xlu0 %2669 }
0x1698   :  { %v4353_v23 = vpop.eup %4352 }
0x1699   :  { %v2514_v24 = vmul.f32 %v4353_v23, %v4349_v15 }
0x169b   :  { %4111 = vmatmul.mubr.msk.f32.vlgmr.msra.gmra.mrb[22].mxu0 %vm206_vm2, %v2514_v24 }
0x169c   :  { %v4355_v25 = vpop.eup %4354  ;;  %4119 = vmatpush3.xpose.msk.msra.mxu0 %vm206_vm2, %v2672_v22  ;;  %4120 = vmatprep.mubr.msk.f32.mxu0 %vm4381_vm1, %v4380_v40 }
0x169d   :  { %v2516_v27 = vmul.f32 %v4355_v25, %v4351_v16  ;;  %4128 = vmatprep.subr.mxu0 %v4380_v40 }
0x169f   :  { %4116 = vmatmul.mubr.msk.f32.vlgmr.msra.gmra.mrb[32].mxu1 %vm206_vm2, %v2516_v27  ;;  %4121 = vmatmul.mubr.msk.f32.vlgmr.msra.gmra.mrb[24].mxu0 %vm206_vm2, %v2670_v28 }
0x16a0   :  { %4124 = vmatpush3.xpose.msk.msra.mxu1 %vm206_vm2, %v2750_v26  ;;  %4125 = vmatprep.mubr.msk.f32.mxu1 %vm4381_vm1, %v4380_v40 }
0x16a1   :  { %4133 = vmatprep.subr.mxu1 %v4380_v40  ;;  %4130 = vmatprep.mubr.msk.f32.mxu0 %vm4381_vm1, %v4380_v40 }
0x16a3   :  { %4126 = vmatmul.mubr.msk.f32.vlgmr.msra.gmra.mrb[34].mxu1 %vm206_vm2, %v2748_v29 }
0x16a4   :  { %4135 = vmatprep.mubr.msk.f32.mxu1 %vm4381_vm1, %v4380_v40 }
0x176e   :  { %v4883_v30 = vpop.f32.mrb[22].mxu0 }
0x176f   :  { %v4112_v32 = vpop.f32.mrb[23].mxu0 }
0x1772   :  { %v4885_v34 = vpop.f32.mrb[32].mxu1  ;;  %v2743_v35 = vpop.f32.mrb[24].mxu0 }
0x1773   :  { %v2744_v36 = vadd.f32 %v2743_v35, %v4503_v60  ;;  %v4117_v37 = vpop.f32.mrb[33].mxu1  ;;  %v4122_v38 = vpop.f32.mrb[25].mxu0 }
0x1774   :  { %v3360_v37 = vld [vmem:[%s5064_s3 + $0xc8] sm:$0xff] }
0x1775   :  { %v2825_v31 = vsel %vm206_vm2, %v2744_v36, -inf }
0x1776   :  { %2826 = vmax.xlane.f32.xlu0 %v2825_v31  ;;  %v2821_v39 = vpop.f32.mrb[34].mxu1  ;;  %v3361_v31 = vld [vmem:[%s5064_s3 + $0xd0] sm:$0xff] }
0x1777   :  { %v2822_v41 = vadd.f32 %v2821_v39, %v4506_v1  ;;  %v4127_v42 = vpop.f32.mrb[35].mxu1  ;;  %v3362_v39 = vld [vmem:[%s5064_s3 + $0xd8] sm:$0xff] }
0x1779   :  { %v2828_v48 = vsel %vm206_vm2, %v2822_v41, -inf }
0x177a   :  { %2829 = vmax.xlane.f32.xlu1 %v2828_v48 }
0x178b   :  { %2923 = vrot.lane.b32.xlu1 %v4787_v18, %s4390_s21 }
0x178c   :  { %2847 = vrot.lane.b32.xlu0 %v4789_v20, %s4390_s21 }
0x178f   :  { %3001 = vrot.lane.b32.xlu1 %v4789_v20, %s4391_s22 }
0x1793   :  { %3079 = vrot.lane.b32.xlu1 %v4787_v18, %s4391_s22 }
0x1797   :  { %3077 = vrot.lane.b32.xlu1 %v4787_v18, %s4392_s23 }
0x1803   :  { %v2827_v46 = vpop.xlane.xlu0 %2826 }
0x1804   :  { %v2831_v33 = vsub.f32 %v2744_v36, %v2827_v46 }
0x1806   :  { %v2833_v49 = vmul.f32 1.442695, %v2831_v33 }
0x1807   :  { %v2848_v50 = vpop.permute.xlu0 %2847  ;;  %v2830_v51 = vpop.xlane.xlu1 %2829 }
0x1808   :  { %4356 = vpow2.f32 %v2833_v49  ;;  %v2832_v52 = vsub.f32 %v2822_v41, %v2830_v51  ;;  %4129 = vmatpush3.msra.mxu0 %v2848_v50  ;;  %v4251_v41 = vpack.c.bf16 %v3362_v39, %v3361_v31 }
0x1809   :  { %4138 = vmatprep.subr.mxu0 %v4380_v40 }
0x180a   :  { %v2835_v5 = vmul.f32 1.442695, %v2832_v52 }
0x180b   :  { %v2924_v3 = vpop.permute.xlu1 %2923 }
0x180c   :  { %4358 = vpow2.f32 %v2835_v5  ;;  %4134 = vmatpush3.msra.mxu1 %v2924_v3 }
0x180d   :  { %4143 = vmatprep.subr.mxu1 %v4380_v40 }
0x180f   :  { %v3002_v62 = vpop.permute.xlu1 %3001 }
0x1812   :  { %v4357_v53 = vpop.eup %4356 }
0x1813   :  { %v2837_v54 = vsel %vm206_vm2, %v4357_v53, 0.0  ;;  %v3080_v4 = vpop.permute.xlu1 %3079 }
0x1814   :  { %2838 = vadd.xlane.f32.xlu0 %v2837_v54 }
0x1816   :  { %v4359_v55 = vpop.eup %4358 }
0x1817   :  { %v2840_v57 = vsel %vm206_vm2, %v4359_v55, 0.0  ;;  %v3078_v7 = vpop.permute.xlu1 %3077 }
0x1818   :  { %2841 = vadd.xlane.f32.xlu0 %v2840_v57 }
0x182e   :  { %2999 = vrot.lane.b32.xlu0 %v4789_v20, %s4392_s23 }
0x18a1   :  { %v2839_v59 = vpop.xlane.xlu0 %2838 }
0x18a2   :  { %4360 = vrcp.f32 %v2839_v59 }
0x18a5   :  { %v2842_v61 = vpop.xlane.xlu0 %2841 }
0x18a6   :  { %4362 = vrcp.f32 %v2842_v61 }
0x18a9   :  { %v3000_v6 = vpop.permute.xlu0 %2999 }
0x18ac   :  { %v4361_v63 = vpop.eup %4360 }
0x18ad   :  { %v2844_v0 = vmul.f32 %v4361_v63, %v4357_v53 }
0x18af   :  { %4131 = vmatmul.mubr.msk.f32.vlgmr.msra.gmra.mrb[26].mxu0 %vm206_vm2, %v2844_v0 }
0x18b0   :  { %v4363_v2 = vpop.eup %4362  ;;  %4139 = vmatpush3.xpose.msk.msra.mxu0 %vm206_vm2, %v3002_v62  ;;  %4140 = vmatprep.mubr.msk.f32.mxu0 %vm4381_vm1, %v4380_v40 }
0x18b1   :  { %v2846_v43 = vmul.f32 %v4363_v2, %v4359_v55  ;;  %4148 = vmatprep.subr.mxu0 %v4380_v40 }
0x18b3   :  { %4136 = vmatmul.mubr.msk.f32.vlgmr.msra.gmra.mrb[36].mxu1 %vm206_vm2, %v2846_v43  ;;  %4141 = vmatmul.mubr.msk.f32.vlgmr.msra.gmra.mrb[28].mxu0 %vm206_vm2, %v3000_v6 }
0x18b4   :  { %4144 = vmatpush3.xpose.msk.msra.mxu1 %vm206_vm2, %v3080_v4  ;;  %4145 = vmatprep.mubr.msk.f32.mxu1 %vm4381_vm1, %v4380_v40 }
0x18b5   :  { %4153 = vmatprep.subr.mxu1 %v4380_v40  ;;  %4150 = vmatprep.mubr.msk.f32.mxu0 %vm4381_vm1, %v4380_v40 }
0x18b7   :  { %4146 = vmatmul.mubr.msk.f32.vlgmr.msra.gmra.mrb[38].mxu1 %vm206_vm2, %v3078_v7 }
0x18b8   :  { %4155 = vmatprep.mubr.msk.f32.mxu1 %vm4381_vm1, %v4380_v40 }
0x1982   :  { %v2919_v8 = vpop.f32.mrb[26].mxu0 }
0x1983   :  { %v4132_v9 = vpop.f32.mrb[27].mxu0 }
0x1986   :  { %v2995_v10 = vpop.f32.mrb[36].mxu1  ;;  %v3073_v11 = vpop.f32.mrb[28].mxu0 }
0x1987   :  { %v3074_v12 = vadd.f32 %v3073_v11, %v4503_v60  ;;  %v4137_v13 = vpop.f32.mrb[37].mxu1  ;;  %v4142_v14 = vpop.f32.mrb[29].mxu0 }
0x1989   :  { %v3155_v15 = vsel %vm206_vm2, %v3074_v12, -inf }
0x198a   :  { %3156 = vmax.xlane.f32.xlu0 %v3155_v15  ;;  %v3151_v45 = vpop.f32.mrb[38].mxu1  ;;  %v3490_v15 = vld [vmem:[%s5064_s3 + $0xe0] sm:$0xff] }
0x198b   :  { %v3152_v16 = vadd.f32 %v3151_v45, %v4506_v1  ;;  %v4147_v17 = vpop.f32.mrb[39].mxu1  ;;  %v3491_v45 = vld [vmem:[%s5064_s3 + $0xe8] sm:$0xff] }
0x198c   :  { %v3492_v17 = vld [vmem:[%s5064_s3 + $0xf0] sm:$0xff] }
0x198d   :  { %v3158_v19 = vsel %vm206_vm2, %v3152_v16, -inf }
0x198e   :  { %3159 = vmax.xlane.f32.xlu1 %v3158_v19  ;;  %v3493_v19 = vld [vmem:[%s5064_s3 + $0xf8] sm:$0xff] }
0x199f   :  { %3253 = vrot.lane.b32.xlu1 %v4787_v18, %s4393_s24 }
0x19a3   :  { %3331 = vrot.lane.b32.xlu1 %v4883_v30, %s4394_s25 }
0x19a7   :  { %3333 = vrot.lane.b32.xlu1 %v4885_v34, %s4394_s25 }
0x19ab   :  { %3341 = vrot.lane.b32.xlu1 %v2995_v10, %s4395_s0 }
0x1a17   :  { %v3157_v40 = vpop.xlane.xlu0 %3156 }
0x1a18   :  { %v3161_v60 = vsub.f32 %v3074_v12, %v3157_v40  ;;  %v4259_v40 = vpack.c.bf16 %v3493_v19, %v3492_v17  ;;  %v3811_v17 = vld [vmem:[%s5065_s4 + $0x10] ss:$0 sm:$0xff] }
0x1a1a   :  { %v3163_v21 = vmul.f32 1.442695, %v3161_v60  ;;  %v3494_v60 = vld [vmem:[%s5064_s3 + $0x100] sm:$0xff] }
0x1a1b   :  { %v3160_v22 = vpop.xlane.xlu1 %3159 }
0x1a1c   :  { %4364 = vpow2.f32 %v3163_v21  ;;  %v3162_v1 = vsub.f32 %v3152_v16, %v3160_v22  ;;  %v4255_v16 = vpack.c.bf16 %v3491_v45, %v3490_v15  ;;  %v3495_v21 = vld [vmem:[%s5064_s3 + $0x108] sm:$0xff]  ;;  %v3496_v22 = vld [vmem:[%s5064_s3 + $0x110] sm:$0xff] }
0x1a1e   :  { %v3165_v23 = vmul.f32 1.442695, %v3162_v1  ;;  %v4263_v1 = vpack.c.bf16 %v3495_v21, %v3494_v60  ;;  %v3812_v60 = vld [vmem:[%s5065_s4 + $0x11] ss:$0 sm:$0xff] }
0x1a1f   :  { %v3254_v24 = vpop.permute.xlu1 %3253 }
0x1a20   :  { %4366 = vpow2.f32 %v3165_v23  ;;  %4154 = vmatpush3.msra.mxu1 %v3254_v24  ;;  %v3497_v23 = vld [vmem:[%s5064_s3 + $0x118] sm:$0xff] }
0x1a21   :  { %4256 = vmatprep.subr.bf16.mxu1 %v4255_v16  ;;  %v4267_v24 = vpack.c.bf16 %v3497_v23, %v3496_v22 }
0x1a23   :  { %v3332_v49 = vpop.permute.xlu1 %3331 }
0x1a24   :  { %v3353_v52 = vsel %vm206_vm2, %v4843_v56, %v3332_v49  ;;  %v3800_v56 = vld [vmem:[%s5065_s4 + $0xb] ss:$0 sm:$0xff] }
0x1a26   :  { %v4365_v25 = vpop.eup %4364 }
0x1a27   :  { %v3167_v18 = vsel %vm206_vm2, %v4365_v25, 0.0  ;;  %v3334_v50 = vpop.permute.xlu1 %3333 }
0x1a28   :  { %3168 = vadd.xlane.f32.xlu0 %v3167_v18  ;;  %v3354_v55 = vsel %vm206_vm2, %v4845_v58, %v3334_v50  ;;  %v3499_v18 = vld [vmem:[%s5064_s3 + $0x128] sm:$0xff] }
0x1a29   :  { %v3803_v50 = vld [vmem:[%s5065_s4 + $0xe] ss:$0 sm:$0xff] }
0x1a2a   :  { %v4367_v26 = vpop.eup %4366 }
0x1a2b   :  { %v3170_v27 = vsel %vm206_vm2, %v4367_v26, 0.0  ;;  %v3342_v5 = vpop.permute.xlu1 %3341 }
0x1a2c   :  { %3171 = vadd.xlane.f32.xlu0 %v3170_v27  ;;  %v3356_v57 = vsel %vm1548_vm4, %v3354_v55, %v3342_v5  ;;  %v3808_v55 = vld [vmem:[%s5065_s4 + $0xf] ss:$0 sm:$0xff] }
0x1a42   :  { %3177 = vrot.lane.b32.xlu0 %v4789_v20, %s4393_s24  ;;  %v3359_v20 = vld [vmem:[%s5064_s3 + $0xc0] sm:$0xff] }
0x1a43   :  { %v4247_v38 = vpack.c.bf16 %v3360_v37, %v3359_v20  ;;  %v3802_v37 = vld [vmem:[%s5065_s4 + $0xd] ss:$0 sm:$0xff] }
0x1a46   :  { %3339 = vrot.lane.b32.xlu0 %v2919_v8, %s4395_s0 }
0x1ab5   :  { %v3169_v28 = vpop.xlane.xlu0 %3168 }
0x1ab6   :  { %4368 = vrcp.f32 %v3169_v28 }
0x1ab9   :  { %v3172_v29 = vpop.xlane.xlu0 %3171 }
0x1aba   :  { %4370 = vrcp.f32 %v3172_v29 }
0x1abd   :  { %v3178_v30 = vpop.permute.xlu0 %3177 }
0x1abe   :  { %4149 = vmatpush3.msra.mxu0 %v3178_v30 }
0x1abf   :  { %4248 = vmatprep.subr.bf16.mxu0 %v4247_v38 }
0x1ac0   :  { %v4369_v32 = vpop.eup %4368 }
0x1ac1   :  { %v3174_v34 = vmul.f32 %v4369_v32, %v4365_v25  ;;  %v3340_v51 = vpop.permute.xlu0 %3339  ;;  %v3498_v25 = vld [vmem:[%s5064_s3 + $0x120] sm:$0xff] }
0x1ac2   :  { %v3355_v3 = vsel %vm1548_vm4, %v3353_v52, %v3340_v51 }
0x1ac3   :  { %4151 = vmatmul.mubr.msk.f32.vlgmr.msra.gmra.mrb[30].mxu0 %vm206_vm2, %v3174_v34 }
0x1ac4   :  { %v4371_v35 = vpop.eup %4370  ;;  %4250 = vmatpush3.bf16.msra.mxu0 %v4247_v38 }
0x1ac5   :  { %v3176_v36 = vmul.f32 %v4371_v35, %v4367_v26  ;;  %4252 = vmatprep.subr.bf16.mxu0 %v4251_v41  ;;  %v4271_v26 = vpack.c.bf16 %v3499_v18, %v3498_v25 }
0x1ac7   :  { %4156 = vmatmul.mubr.msk.f32.vlgmr.msra.gmra.mrb[40].mxu1 %vm206_vm2, %v3176_v36  ;;  %v3801_v36 = vld [vmem:[%s5065_s4 + $0xc] ss:$0 sm:$0xff] }
0x1ac8   :  { %4254 = vmatpush3.bf16.msra.mxu0 %v4251_v41  ;;  %4258 = vmatpush3.bf16.msra.mxu1 %v4255_v16 }
0x1ac9   :  { %4260 = vmatprep.subr.bf16.mxu1 %v4259_v40  ;;  %4264 = vmatprep.subr.bf16.mxu0 %v4263_v1 }
0x1acc   :  { %4262 = vmatpush3.bf16.msra.mxu1 %v4259_v40 }
0x1b96   :  { %v3249_v42 = vpop.f32.mrb[30].mxu0 }
0x1b97   :  { %3347 = vrot.lane.b32.xlu0 %v3249_v42, %s4396_s8  ;;  %v4152_v48 = vpop.f32.mrb[31].mxu0 }
0x1b9a   :  { %v3325_v46 = vpop.f32.mrb[40].mxu1 }
0x1b9b   :  { %3349 = vrot.lane.b32.xlu1 %v3325_v46, %s4396_s8  ;;  %v4157_v33 = vpop.f32.mrb[41].mxu1  ;;  %v3500_v46 = vld [vmem:[%s5064_s3 + $0x130] sm:$0xff] }
0x1b9c   :  { %v3501_v33 = vld [vmem:[%s5064_s3 + $0x138] sm:$0xff] }
0x1b9d   :  { %v4275_v49 = vpack.c.bf16 %v3501_v33, %v3500_v46 }
0x1c09   :  { %v3348_v53 = vpop.permute.xlu0 %3347 }
0x1c0a   :  { %v3357_v54 = vsel %vm1551_vm3, %v3355_v3, %v3348_v53 }
0x1c0b   :  { %4166 = vmatprep.mubr.msk.f32.mxu0 %vm62_vm0, %v3357_v54 }
0x1c0d   :  { %v3350_v59 = vpop.permute.xlu1 %3349 }
0x1c0e   :  { %v3358_v61 = vsel %vm1551_vm3, %v3356_v57, %v3350_v59 }
0x1c0f   :  { %4167 = vmatmul.mubr.msk.f32.vlgmr.msra.gmra.mrb[32].mxu0 %vm62_vm0, %v3358_v61 }
0x1c10   :  { %4266 = vmatpush3.bf16.msra.mxu0 %v4263_v1 }
0x1c11   :  { %4268 = vmatprep.subr.bf16.mxu0 %v4267_v24 }
0x1c14   :  { %4270 = vmatpush3.bf16.msra.mxu0 %v4267_v24 }
0x1c15   :  { %4272 = vmatprep.subr.bf16.mxu0 %v4271_v26 }
0x1c18   :  { %4274 = vmatpush3.bf16.msra.mxu0 %v4271_v26 }
0x1c19   :  { %4276 = vmatprep.subr.bf16.mxu0 %v4275_v49 }
0x1c1c   :  { %4278 = vmatpush3.bf16.msra.mxu0 %v4275_v49 }
0x1ce2   :  { %v4168_v62 = vpop.f32.mrb[32].mxu0 }
0x1ce3   :  { %v3445_v63 = vadd.f32 %v4168_v62, %v4739_v44  ;;  %v3435_v0 = vpop.f32.mrb[33].mxu0 }
0x1ce4   :  { %v3444_v2 = vadd.f32 %v3435_v0, %v4741_v47 }
0x1ce5   :  { %v4970_v4 = vadd.f32 %v3800_v56, %v3445_v63 }
0x1ce6   :  { %v4972_v58 = vadd.f32 %v3800_v56, %v3444_v2 }
0x1ce7   :  { %v3455_v43 = vsel %vm62_vm0, %v4970_v4, 0.0 }
0x1ce8   :  { %3456 = vadd.xlane.f32.xlu1 %v3455_v43  ;;  %v3452_v6 = vsel %vm62_vm0, %v4972_v58, 0.0 }
0x1ce9   :  { %3453 = vadd.xlane.f32.xlu0 %v3452_v6 }
0x1d75   :  { %v3457_v7 = vpop.xlane.xlu1 %3456 }
0x1d76   :  { %v3459_v8 = vmul.f32 0.03125, %v3457_v7  ;;  %v3454_v9 = vpop.xlane.xlu0 %3453 }
0x1d77   :  { %v3458_v10 = vmul.f32 0.03125, %v3454_v9 }
0x1d78   :  { %v3461_v44 = vsub.f32 %v4970_v4, %v3459_v8 }
0x1d79   :  { %v3460_v47 = vsub.f32 %v4972_v58, %v3458_v10 }
0x1d7a   :  { %v3463_v13 = vmul.f32 %v3461_v44, %v3461_v44 }
0x1d7b   :  { %v3462_v11 = vmul.f32 %v3460_v47, %v3460_v47 }
0x1d7c   :  { %v3467_v14 = vsel %vm62_vm0, %v3463_v13, 0.0 }
0x1d7d   :  { %v3464_v12 = vsel %vm62_vm0, %v3462_v11, 0.0 }
0x1d7e   :  { %3465 = vadd.xlane.f32.xlu0 %v3464_v12 }
0x1d82   :  { %3468 = vadd.xlane.f32.xlu0 %v3467_v14 }
0x1e0b   :  { %v3466_v27 = vpop.xlane.xlu0 %3465 }
0x1e0c   :  { %v3470_v28 = vmul.f32 0.03125, %v3466_v27 }
0x1e0e   :  { %v3472_v29 = vadd.f32 1e-05, %v3470_v28 }
0x1e0f   :  { %v3469_v30 = vpop.xlane.xlu0 %3468 }
0x1e10   :  { %4372 = vrsqrt.f32 %v3472_v29  ;;  %v3471_v32 = vmul.f32 0.03125, %v3469_v30 }
0x1e12   :  { %v3473_v34 = vadd.f32 1e-05, %v3471_v32 }
0x1e14   :  { %4374 = vrsqrt.f32 %v3473_v34 }
0x1e1a   :  { %v4373_v35 = vpop.eup %4372 }
0x1e1b   :  { %v3476_v20 = vmul.f32 %v4373_v35, %v3460_v47 }
0x1e1d   :  { %v3482_v38 = vmul.f32 %v3801_v36, %v3476_v20 }
0x1e1e   :  { %v4375_v31 = vpop.eup %4374 }
0x1e1f   :  { %v3477_v39 = vmul.f32 %v4375_v31, %v3461_v44  ;;  %v3488_v41 = vadd.f32 %v3802_v37, %v3482_v38 }
0x1e21   :  { %v3483_v42 = vmul.f32 %v3801_v36, %v3477_v39  ;;  %4177 = vmatprep.mubr.msk.f32.mxu1 %vm62_vm0, %v3488_v41 }
0x1e23   :  { %v3489_v48 = vadd.f32 %v3802_v37, %v3483_v42 }
0x1e25   :  { %4178 = vmatmul.mubr.msk.f32.vlgmr.msra.gmra.mrb[42].mxu1 %vm62_vm0, %v3489_v48 }
0x1ef8   :  { %v4179_v51 = vpop.f32.mrb[42].mxu1 }
0x1ef9   :  { %v3584_v52 = vadd.f32 %v4179_v51, %v3803_v50  ;;  %v3578_v5 = vpop.f32.mrb[43].mxu1 }
0x1efa   :  { %v3579_v3 = vadd.f32 %v3803_v50, %v3578_v5 }
0x1efb   :  { %v3588_v54 = vmax.f32 %v3584_v52, 0.0 }
0x1efc   :  { %v3587_v53 = vmax.f32 %v3579_v3, 0.0 }
0x1efe   :  { %4196 = vmatprep.mubr.msk.f32.mxu0 %vm1784_vm5, %v3587_v53 }
0x1eff   :  { %4197 = vmatmul.mubr.msk.f32.vlgmr.msra.gmra.mrb[34].mxu0 %vm1784_vm5, %v3588_v54 }
0x1fd2   :  { %v4198_v57 = vpop.f32.mrb[34].mxu0 }
0x1fd3   :  { %v3671_v59 = vadd.f32 %v4198_v57, %v4970_v4  ;;  %v3661_v61 = vpop.f32.mrb[35].mxu0 }
0x1fd4   :  { %v3670_v56 = vadd.f32 %v3661_v61, %v4972_v58 }
0x1fd5   :  { %v3677_v62 = vadd.f32 %v3808_v55, %v3671_v59 }
0x1fd6   :  { %v3676_v63 = vadd.f32 %v3808_v55, %v3670_v56 }
0x1fd7   :  { %3810 = vst.msk [vmem:[%s5067_s5 + $0x18] sm:$0xff] %vm62_vm0, %v3677_v62  ;;  %v3686_v0 = vsel %vm62_vm0, %v3677_v62, 0.0 }
0x1fd8   :  { %3809 = vst.msk [vmem:[%s5067_s5 + $0x10] sm:$0xff] %vm62_vm0, %v3676_v63  ;;  %3687 = vadd.xlane.f32.xlu1 %v3686_v0  ;;  %v3683_v2 = vsel %vm62_vm0, %v3676_v63, 0.0 }
0x1fd9   :  { %3684 = vadd.xlane.f32.xlu0 %v3683_v2 }
0x2065   :  { %v3688_v4 = vpop.xlane.xlu1 %3687 }
0x2066   :  { %v3690_v58 = vmul.f32 0.03125, %v3688_v4  ;;  %v3685_v43 = vpop.xlane.xlu0 %3684 }
0x2067   :  { %v3689_v6 = vmul.f32 0.03125, %v3685_v43 }
0x2068   :  { %v3692_v7 = vsub.f32 %v3677_v62, %v3690_v58 }
0x2069   :  { %v3691_v8 = vsub.f32 %v3676_v63, %v3689_v6 }
0x206a   :  { %v3694_v9 = vmul.f32 %v3692_v7, %v3692_v7 }
0x206b   :  { %v3693_v10 = vmul.f32 %v3691_v8, %v3691_v8 }
0x206c   :  { %v3698_v44 = vsel %vm62_vm0, %v3694_v9, 0.0 }
0x206d   :  { %3699 = vadd.xlane.f32.xlu1 %v3698_v44  ;;  %v3695_v47 = vsel %vm62_vm0, %v3693_v10, 0.0 }
0x206e   :  { %3696 = vadd.xlane.f32.xlu0 %v3695_v47 }
0x20fa   :  { %v3700_v11 = vpop.xlane.xlu1 %3699 }
0x20fb   :  { %v3702_v12 = vmul.f32 0.03125, %v3700_v11  ;;  %v3697_v13 = vpop.xlane.xlu0 %3696 }
0x20fc   :  { %v3701_v14 = vmul.f32 0.03125, %v3697_v13 }
0x20fd   :  { %v3704_v15 = vadd.f32 1e-05, %v3702_v12 }
0x20fe   :  { %v3703_v45 = vadd.f32 1e-05, %v3701_v14 }
0x20ff   :  { %4376 = vrsqrt.f32 %v3704_v15 }
0x2100   :  { %4378 = vrsqrt.f32 %v3703_v45 }
0x2109   :  { %v4377_v16 = vpop.eup %4376 }
0x210a   :  { %v4379_v19 = vpop.eup %4378  ;;  %v3708_v40 = vmul.f32 %v4377_v16, %v3692_v7 }
0x210b   :  { %v3707_v21 = vmul.f32 %v4379_v19, %v3691_v8 }
0x210c   :  { %v3714_v22 = vmul.f32 %v3811_v17, %v3708_v40 }
0x210d   :  { %v3713_v1 = vmul.f32 %v3811_v17, %v3707_v21 }
0x210e   :  { %v3720_v23 = vadd.f32 %v3812_v60, %v3714_v22 }
0x210f   :  { %v3719_v24 = vadd.f32 %v3812_v60, %v3713_v1 }
0x2110   :  { %3814 = vst.msk [vmem:[%s5067_s5 + $0x28] sm:$0xff] %vm62_vm0, %v3720_v23 }
0x2111   :  { %3813 = vst.msk [vmem:[%s5067_s5 + $0x20] sm:$0xff] %vm62_vm0, %v3719_v24 }

</bundles_post_ra>
